<compile_context>
chip_gen: v7x
topology: tpu7x:2x2x1
jax: 0.10.0
libtpu: 0.0.40
codegen_flags: <defaults>
</compile_context>

<pallas_src>
import jax
import jax.numpy as jnp
from jax import lax
from jax.experimental import pallas as pl
from jax.experimental.pallas import tpu as pltpu


# --------------------------------------------------------------------------- #
# Fused Pallas kernel
# --------------------------------------------------------------------------- #
def _make_ssc64_kernel(num_classes, tile_rows, chunk_rows, has_mask):
    """Build the fused level-64 kernel for one (tile_rows, 128) voxel tile of one batch.

    Inputs : scalars (SMEM, (C+1,) f32: [0]=pos_weight, [1+c]=class weight c),
             sem (C,TG,128), occ logit (TG,128), occ gt (TG,128), labels (TG,128) i32,
             [mask (TG,128) i32 if has_mask].
    Outputs: sigmoid occupancy (TG,128), argmax classes (TG,128) i32, and one packed
             (1,4,8,128) stat tile: [occ_loss, occ_count, sem_loss, mask_count] partial sums.
    """
    n_chunks = tile_rows // chunk_rows

    def fold8(v):                                   # (RC,128) -> (8,128), sublane folds only
        acc = v[0:8, :]
        for k in range(1, v.shape[0] // 8):
            acc = acc + v[8 * k:8 * (k + 1), :]
        return acc

    def kernel(scalars_ref, sem_ref, occ_ref, gt_ref, lab_ref, *rest):
        if has_mask:
            mask_ref, occ_out_ref, cls_out_ref, stat_ref = rest
        else:
            mask_ref = None
            occ_out_ref, cls_out_ref, stat_ref = rest

        posw = scalars_ref[0]

        def chunk(r, carry):
            occ_l, occ_c, sem_l, msk_c = carry
            off = pl.multiple_of(r * chunk_rows, chunk_rows)
            rows = pl.ds(off, chunk_rows)

            labels = lab_ref[rows, :]                          # (RC,128) int32
            validf = (labels != 255).astype(jnp.float32)       # derived in-kernel (no extra DMA)
            if has_mask:
                maskb = mask_ref[rows, :] != 0
                maskf = maskb.astype(jnp.float32)

            # ---- occupancy: BCE-with-logits (+pos_weight as in the torch code), sigmoid out ----
            x = occ_ref[rows, :].astype(jnp.float32)
            y = gt_ref[rows, :].astype(jnp.float32)
            # occupancy_weights == 1 except mean(w[1:])/w[0] where gt==0, used as torch
            # pos_weight (scales only the positive term) — kept faithful to the torch source.
            pw = jnp.where(y == 0.0, posw, 1.0)
            sp_pos = jnp.maximum(x, 0.0) + jnp.log1p(jnp.exp(-jnp.abs(x)))   # softplus(x)
            sp_neg = sp_pos - x                                              # softplus(-x)
            bce = pw * y * sp_neg + (1.0 - y) * sp_pos
            prob = jax.nn.sigmoid(x)
            if has_mask:
                prob = jnp.where(maskb, prob, 0.0)
            occ_out_ref[rows, :] = prob.astype(occ_out_ref.dtype)
            # fold/accumulate occupancy partials NOW so x/y/pw/bce/validf die before the
            # class loop (bounds the live vreg set -> no spills).
            occ_l = occ_l + fold8(bce * validf)
            occ_c = occ_c + fold8(validf)

            # ---- semantic: single-pass online logsumexp + fused argmax + target gather ----
            lc = sem_ref[0, rows, :].astype(jnp.float32)
            m = lc
            sumexp = jnp.ones_like(lc)                         # exp(lc - m) == 1
            best = jnp.zeros(labels.shape, jnp.int32)
            sel = labels == 0
            logit_y = jnp.where(sel, lc, 0.0)
            w_y = jnp.where(sel, scalars_ref[1], 0.0)
            for cidx in range(1, num_classes):
                lc = sem_ref[cidx, rows, :].astype(jnp.float32)   # one load / cast per class
                upd = lc > m                                      # strict > == first-max tie-break
                m_new = jnp.maximum(m, lc)
                best = jnp.where(upd, cidx, best)
                sumexp = sumexp * jnp.exp(m - m_new) + jnp.exp(lc - m_new)
                m = m_new
                sel = labels == cidx
                logit_y = jnp.where(sel, lc, logit_y)
                w_y = jnp.where(sel, scalars_ref[1 + cidx], w_y)
            lse = m + jnp.log(sumexp)
            ce = jnp.where(labels == 255, 0.0, w_y * (lse - logit_y))   # ignore_index=255

            # TODO(synk): classes kept int32 to mirror torch.argmax (LongTensor); int8 would
            # further cut output bandwidth if the consumer accepts it.
            if has_mask:
                cls_out_ref[rows, :] = jnp.where(maskb, best, 0)
                sem_l = sem_l + fold8(ce * maskf)
                msk_c = msk_c + fold8(maskf)
            else:
                cls_out_ref[rows, :] = best
                sem_l = sem_l + fold8(ce)          # mask statically all-ones: count is constant
            return occ_l, occ_c, sem_l, msk_c

        z = jnp.zeros((8, 128), jnp.float32)
        occ_l, occ_c, sem_l, msk_c = lax.fori_loop(0, n_chunks, chunk, (z, z, z, z))

        # one packed stat tile per grid step (single writeback DMA instead of four)
        stat_ref[0, 0] = occ_l
        stat_ref[0, 1] = occ_c
        stat_ref[0, 2] = sem_l
        stat_ref[0, 3] = msk_c

    return kernel


# --------------------------------------------------------------------------- #
# Pallas wrapper
# --------------------------------------------------------------------------- #
def _plan_tiles(rows, batch, cap=128):
    """Pick (tile_rows, num_tiles): tile_rows % 8 == 0, tile_rows <= cap, padded rows =
    num_tiles * tile_rows, and batch*num_tiles >= 2 when possible (both v7x TensorCores)."""
    rows8 = max(8, ((rows + 7) // 8) * 8)
    tg = min(cap, rows8)
    nt = -(-rows8 // tg)
    if batch * nt < 2 and rows8 > 8:
        tg = ((-(-rows8 // 2) + 7) // 8) * 8
        nt = -(-rows8 // tg)
    return tg, nt


def ssc64_fused_pallas(sem_flat, occ_flat, gt_flat, lab_flat, mask_flat, weights,
                       *, tile_rows_cap=128):
    """sem_flat (B,C,N) float (f32/bf16); occ_flat/gt_flat (B,N) float; lab_flat (B,N) int32;
    mask_flat (B,N) int32 or None (statically all-ones); weights (C,) f32.
    Returns occ_prob (B,N) [occ dtype], classes (B,N) i32, occ_loss_sum, occ_count,
    sem_loss_sum, sem_count (f32 scalars)."""
    b, c, n = sem_flat.shape
    has_mask = mask_flat is not None

    rows = -(-n // 128)
    tg, nt = _plan_tiles(rows, b, tile_rows_cap)
    gp = nt * tg
    pad = gp * 128 - n

    if pad:
        sem_flat = jnp.pad(sem_flat, ((0, 0), (0, 0), (0, pad)))
        occ_flat = jnp.pad(occ_flat, ((0, 0), (0, pad)))
        gt_flat = jnp.pad(gt_flat, ((0, 0), (0, pad)))
        lab_flat = jnp.pad(lab_flat, ((0, 0), (0, pad)), constant_values=255)   # ignored
        if has_mask:
            mask_flat = jnp.pad(mask_flat, ((0, 0), (0, pad)))                  # masked out

    sem4 = sem_flat.reshape(b, c, gp, 128)
    occ3 = occ_flat.reshape(b, gp, 128)
    gt3 = gt_flat.reshape(b, gp, 128)
    lab3 = lab_flat.reshape(b, gp, 128)

    # 1-D SMEM scalars: [0]=pos_weight, [1+c]=class weight (2-D SMEM would pad to (8,128) words)
    posw = (jnp.mean(weights[1:]) / weights[0]).reshape(1)
    scalars = jnp.concatenate([posw, weights.reshape(c)], axis=0).astype(jnp.float32)

    # row sub-chunk inside the kernel: bounds the live vreg set while keeping big DMA tiles
    rc = 32 if tg % 32 == 0 else (16 if tg % 16 == 0 else 8)

    smem_spec = pl.BlockSpec(memory_space=pltpu.MemorySpace.SMEM)
    sem_spec = pl.BlockSpec((None, c, tg, 128), lambda bb, i: (bb, 0, i, 0))
    row_spec = pl.BlockSpec((None, tg, 128), lambda bb, i: (bb, i, 0))
    stat_spec = pl.BlockSpec((None, 1, 4, 8, 128), lambda bb, i: (bb, i, 0, 0, 0))

    in_specs = [smem_spec, sem_spec, row_spec, row_spec, row_spec]
    args = [scalars, sem4, occ3, gt3, lab3]
    if has_mask:
        in_specs.append(row_spec)
        args.append(mask_flat.reshape(b, gp, 128))

    out_shapes = (
        jax.ShapeDtypeStruct((b, gp, 128), occ_flat.dtype),      # masked sigmoid occupancy
        jax.ShapeDtypeStruct((b, gp, 128), jnp.int32),           # masked argmax classes
        jax.ShapeDtypeStruct((b, nt, 4, 8, 128), jnp.float32),   # packed per-tile partial sums
    )
    out_specs = (row_spec, row_spec, stat_spec)

    kernel = _make_ssc64_kernel(c, tg, rc, has_mask)
    occ_prob, classes, stats = pl.pallas_call(
        kernel,
        out_shape=out_shapes,
        grid=(b, nt),
        in_specs=in_specs,
        out_specs=out_specs,
        compiler_params=pltpu.CompilerParams(
            dimension_semantics=("parallel", "parallel")),
    )(*args)

    occ_ls = jnp.sum(stats[:, :, 0])
    occ_cnt = jnp.sum(stats[:, :, 1])
    sem_ls = jnp.sum(stats[:, :, 2])
    sem_cnt = jnp.sum(stats[:, :, 3]) if has_mask else jnp.asarray(b * n, jnp.float32)

    occ_prob = occ_prob.reshape(b, gp * 128)[:, :n]
    classes = classes.reshape(b, gp * 128)[:, :n]
    return occ_prob, classes, occ_ls, occ_cnt, sem_ls, sem_cnt


# --------------------------------------------------------------------------- #
# SSCHead (JAX / Pallas port of the level-64 dense path)
# --------------------------------------------------------------------------- #
def get_sparse_values(tensor, coordinates):
    # tensor: (B, C, X, Y, Z), coordinates: (M, 4) int [batch, x, y, z]
    return tensor[coordinates[:, 0], :, coordinates[:, 1], coordinates[:, 2], coordinates[:, 3]]


class SSCHeadPallas:
    """SSCHead forward (level-64 hierarchy). compute_occupancy_64_loss and
    compute_semantic_64_loss are fused into forward_64 (they stream the same voxels)."""

    def __init__(self, num_output_channels=16, unet_features=16, resnet_blocks=1, suffix=""):
        self.suffix = suffix
        self.num_output_channels = num_output_channels
        # TODO(synk): UNetHybrid / GeometryHeadSparse / ClassificationHeadSparse backbones are
        # external modules (not provided in the reference); level-64 predictions are inputs.
        # TODO(synk): Lovasz_loss (sorting-based) has no clean Pallas equivalent; the
        # LOVASZ_LOSS_LAMBDA == 0 path is implemented.

    # ---- level 64 (fused occupancy + semantic) ----------------------------- #
    def forward_64(self, predictions, targets, valid_mask, weights):
        occupancy_gt = targets["complet_occupancy_64"]
        labels = targets["complet_labels_64"]
        occ_pred, sem_pred = predictions[0], predictions[1]
        b, c, d, h, w = sem_pred.shape
        nb = d * h * w

        sem_flat = sem_pred.reshape(b, c, nb)                # native layout: no moveaxis copy
        occ_flat = occ_pred[:, 0].reshape(b, nb)
        gt_flat = occupancy_gt.reshape(b, nb).astype(jnp.float32)
        lab_flat = labels.reshape(b, nb).astype(jnp.int32)
        if valid_mask is None:
            mask_flat = None      # statically all-ones mask: no HBM array, no output masking
        else:
            mask_flat = jnp.broadcast_to(valid_mask, (b, d, h, w)).reshape(b, nb).astype(jnp.int32)

        occ_prob, classes, occ_ls, occ_cnt, sem_ls, sem_cnt = ssc64_fused_pallas(
            sem_flat, occ_flat, gt_flat, lab_flat, mask_flat, weights.astype(jnp.float32))

        # masked means (safe divide: no inf/nan on the count == 0 branch)
        occ_loss = jnp.where(occ_cnt > 0, occ_ls / jnp.maximum(occ_cnt, 1.0), 0.0)
        sem_loss = jnp.where(sem_cnt > 0, sem_ls / jnp.maximum(sem_cnt, 1.0), 0.0)

        occupancy = occ_prob.reshape(b, 1, d, h, w)
        prediction_classes = classes.reshape(b, d, h, w)

        losses = {"occupancy_64": occ_loss, "semantic_64": sem_loss}
        results = {"occupancy_64": occupancy, "semantic_64": prediction_classes}
        return losses, results

    # ---- full forward ------------------------------------------------------ #
    def forward(self, targets, predictions_64, weights):
        # Original builds complet_valid = torch.ones(1, 64, 64, 8).bool(): statically all ones,
        # so the mask array and all masking work are specialized away (pass None).
        losses, results = {}, {}
        losses_64, results_64 = self.forward_64(predictions_64, targets, None, weights)
        losses.update(losses_64)
        results.update(results_64)
        # TODO(synk): 128 / 256 sparse hierarchy (MinkowskiEngine SparseTensor pruning,
        # GeometryHeadSparse, ClassificationHeadSparse) not reproducible without the backbone;
        # the original code also returns early when those predictions are None.
        features = None
        return losses, results, features


# --------------------------------------------------------------------------- #
# Demo + reference check
# --------------------------------------------------------------------------- #
def _reference(occ_logits, sem_logits, occ_gt, labels, weights, mask=None):
    # occupancy: BCE-with-logits, pos_weight where gt==0, masked-mean over labels!=255
    x = occ_logits[:, 0].astype(jnp.float32)
    pw_scalar = jnp.mean(weights[1:]) / weights[0]
    pw = jnp.where(occ_gt == 0, pw_scalar, 1.0)
    sp = jax.nn.softplus
    bce = pw * occ_gt * sp(-x) + (1.0 - occ_gt) * sp(x)
    valid = labels != 255
    occ_loss = jnp.sum(jnp.where(valid, bce, 0.0)) / jnp.sum(valid)

    # semantic: weighted CE, ignore_index=255, masked_select(mask).mean()
    logp = jax.nn.log_softmax(sem_logits.astype(jnp.float32), axis=1)
    safe = jnp.where(labels == 255, 0, labels)
    gathered = jnp.take_along_axis(logp, safe[:, None], axis=1)[:, 0]
    ce = jnp.where(labels == 255, 0.0, weights[safe] * -gathered)

    if mask is None:
        maskb = jnp.ones(labels.shape, bool)
    else:
        maskb = jnp.broadcast_to(mask, labels.shape)
    sem_loss = jnp.sum(jnp.where(maskb, ce, 0.0)) / jnp.sum(maskb)

    occ_prob = jnp.where(maskb[:, None], jax.nn.sigmoid(occ_logits.astype(jnp.float32)), 0.0)
    classes = jnp.where(maskb, jnp.argmax(sem_logits, axis=1).astype(jnp.int32), 0)
    return occ_loss, sem_loss, occ_prob, classes


if __name__ == "__main__":
    key = jax.random.PRNGKey(0)
    k1, k2, k3, k4, k5, k6 = jax.random.split(key, 6)

    B, C, D, H, W = 2, 16, 16, 16, 8   # small demo shapes; real model uses (1, 16, 64, 64, 8)
    occ_logits = jax.random.normal(k1, (B, 1, D, H, W), dtype=jnp.float32)
    sem_logits = jax.random.normal(k2, (B, C, D, H, W), dtype=jnp.float32)
    occ_gt = (jax.random.uniform(k3, (B, D, H, W)) > 0.5).astype(jnp.float32)
    labels = jax.random.randint(k4, (B, D, H, W), 0, C).astype(jnp.int32)
    labels = jnp.where(jax.random.uniform(k5, (B, D, H, W)) < 0.1, 255, labels)
    weights = jnp.linspace(0.5, 2.0, C).astype(jnp.float32)

    targets = {"complet_occupancy_64": occ_gt, "complet_labels_64": labels}
    head = SSCHeadPallas(num_output_channels=C)

    # ---- common path: statically all-ones complet_valid (mask specialized away) ----
    losses, results, _ = head.forward(targets, (occ_logits, sem_logits), weights)
    jax.block_until_ready((losses, results))

    ref_occ_loss, ref_sem_loss, ref_occ_prob, ref_classes = _reference(
        occ_logits, sem_logits, occ_gt, labels, weights, mask=None)

    assert jnp.allclose(losses["occupancy_64"], ref_occ_loss, rtol=1e-4, atol=1e-5), (
        losses["occupancy_64"], ref_occ_loss)
    assert jnp.allclose(losses["semantic_64"], ref_sem_loss, rtol=1e-4, atol=1e-5), (
        losses["semantic_64"], ref_sem_loss)
    assert results["occupancy_64"].shape == (B, 1, D, H, W)
    assert results["semantic_64"].shape == (B, D, H, W)
    assert jnp.allclose(results["occupancy_64"], ref_occ_prob, rtol=1e-5, atol=1e-6)
    assert jnp.array_equal(results["semantic_64"], ref_classes)

    # ---- masked path: explicit valid_mask exercises the has_mask kernel variant ----
    valid_mask = jax.random.uniform(k6, (1, D, H, W)) > 0.3
    losses_m, results_m = head.forward_64((occ_logits, sem_logits), targets, valid_mask, weights)
    jax.block_until_ready((losses_m, results_m))

    ref_occ_loss_m, ref_sem_loss_m, ref_occ_prob_m, ref_classes_m = _reference(
        occ_logits, sem_logits, occ_gt, labels, weights, mask=valid_mask)

    assert jnp.allclose(losses_m["occupancy_64"], ref_occ_loss_m, rtol=1e-4, atol=1e-5)
    assert jnp.allclose(losses_m["semantic_64"], ref_sem_loss_m, rtol=1e-4, atol=1e-5)
    assert jnp.allclose(results_m["occupancy_64"], ref_occ_prob_m, rtol=1e-5, atol=1e-6)
    assert jnp.array_equal(results_m["semantic_64"], ref_classes_m)

    print("KERNEL_OK")
</pallas_src>

<mosaic_0001>
module attributes {stable_mosaic.version = 11 : i64} {
  func.func @kernel(%arg0: i32, %arg1: i32, %arg2: memref<17xf32, #tpu.memory_space<smem>>, %arg3: memref<1x16x16x128xf32, #tpu.memory_space<vmem>>, %arg4: memref<1x16x128xf32, #tpu.memory_space<vmem>>, %arg5: memref<1x16x128xf32, #tpu.memory_space<vmem>>, %arg6: memref<1x16x128xi32, #tpu.memory_space<vmem>>, %arg7: memref<1x16x128xf32, #tpu.memory_space<vmem>>, %arg8: memref<1x16x128xi32, #tpu.memory_space<vmem>>, %arg9: memref<1x1x4x8x128xf32, #tpu.memory_space<vmem>>) attributes {dimension_semantics = [#tpu.dimension_semantics<parallel>, #tpu.dimension_semantics<parallel>], iteration_bounds = array<i64: 2, 1>, scalar_prefetch = 0 : i64, scratch_operands = 0 : i64, tpu.core_type = #tpu.core_type<tc>, window_params = [{transform_indices = @transform_0, window_bounds = array<i64: 17>}, {transform_indices = @transform_1, window_bounds = array<i64: 1, 16, 16, 128>}, {transform_indices = @transform_2, window_bounds = array<i64: 1, 16, 128>}, {transform_indices = @transform_3, window_bounds = array<i64: 1, 16, 128>}, {transform_indices = @transform_4, window_bounds = array<i64: 1, 16, 128>}, {transform_indices = @transform_5, window_bounds = array<i64: 1, 16, 128>}, {transform_indices = @transform_6, window_bounds = array<i64: 1, 16, 128>}, {transform_indices = @transform_7, window_bounds = array<i64: 1, 1, 4, 8, 128>}]} {
    %c0 = arith.constant 0 : index
    %0 = memref.load %arg2[%c0] : memref<17xf32, #tpu.memory_space<smem>>
    %cst = arith.constant 0.000000e+00 : f32
    %1 = vector.broadcast %cst : f32 to vector<8x128xf32>
    %c0_i32 = arith.constant 0 : i32
    %c16_i32 = arith.constant 16 : i32
    %2 = arith.muli %c0_i32, %c16_i32 : i32
    %3 = tpu.assume_multiple %2, 16 : i32
    %c0_0 = arith.constant 0 : index
    %4 = arith.index_cast %3 : i32 to index
    %c0_1 = arith.constant 0 : index
    %5 = vector.load %arg6[%c0_0, %4, %c0_1] : memref<1x16x128xi32, #tpu.memory_space<vmem>>, vector<1x16x128xi32>
    %6 = vector.shape_cast %5 : vector<1x16x128xi32> to vector<16x128xi32>
    %c255_i32 = arith.constant 255 : i32
    %7 = vector.broadcast %c255_i32 : i32 to vector<16x128xi32>
    %8 = arith.cmpi ne, %6, %7 : vector<16x128xi32>
    %9 = arith.extui %8 : vector<16x128xi1> to vector<16x128xi32>
    %10 = arith.sitofp %9 : vector<16x128xi32> to vector<16x128xf32>
    %c0_2 = arith.constant 0 : index
    %11 = arith.index_cast %3 : i32 to index
    %c0_3 = arith.constant 0 : index
    %12 = vector.load %arg4[%c0_2, %11, %c0_3] : memref<1x16x128xf32, #tpu.memory_space<vmem>>, vector<1x16x128xf32>
    %13 = vector.shape_cast %12 : vector<1x16x128xf32> to vector<16x128xf32>
    %c0_4 = arith.constant 0 : index
    %14 = arith.index_cast %3 : i32 to index
    %c0_5 = arith.constant 0 : index
    %15 = vector.load %arg5[%c0_4, %14, %c0_5] : memref<1x16x128xf32, #tpu.memory_space<vmem>>, vector<1x16x128xf32>
    %16 = vector.shape_cast %15 : vector<1x16x128xf32> to vector<16x128xf32>
    %cst_6 = arith.constant 0.000000e+00 : f32
    %17 = vector.broadcast %cst_6 : f32 to vector<16x128xf32>
    %18 = arith.cmpf oeq, %16, %17 : vector<16x128xf32>
    %cst_7 = arith.constant 1.000000e+00 : f32
    %19 = vector.broadcast %0 : f32 to vector<16x128xf32>
    %20 = vector.broadcast %cst_7 : f32 to vector<16x128xf32>
    %21 = arith.select %18, %19, %20 : vector<16x128xi1>, vector<16x128xf32>
    %cst_8 = arith.constant 0.000000e+00 : f32
    %22 = vector.broadcast %cst_8 : f32 to vector<16x128xf32>
    %23 = arith.maximumf %13, %22 : vector<16x128xf32>
    %24 = math.absf %13 : vector<16x128xf32>
    %cst_9 = arith.constant 0.000000e+00 : f32
    %25 = vector.broadcast %cst_9 : f32 to vector<16x128xf32>
    %26 = arith.subf %25, %24 : vector<16x128xf32>
    %27 = math.exp %26 : vector<16x128xf32>
    %28 = math.log1p %27 : vector<16x128xf32>
    %29 = arith.addf %23, %28 : vector<16x128xf32>
    %30 = arith.subf %29, %13 : vector<16x128xf32>
    %31 = arith.mulf %21, %16 : vector<16x128xf32>
    %32 = arith.mulf %31, %30 : vector<16x128xf32>
    %cst_10 = arith.constant 1.000000e+00 : f32
    %33 = vector.broadcast %cst_10 : f32 to vector<16x128xf32>
    %34 = arith.subf %33, %16 : vector<16x128xf32>
    %35 = arith.mulf %34, %29 : vector<16x128xf32>
    %36 = arith.addf %32, %35 : vector<16x128xf32>
    %37 = arith.negf %13 : vector<16x128xf32>
    %38 = math.exp %37 : vector<16x128xf32>
    %cst_11 = arith.constant 1.000000e+00 : f32
    %39 = vector.broadcast %cst_11 : f32 to vector<16x128xf32>
    %40 = arith.addf %39, %38 : vector<16x128xf32>
    %41 = arith.divf %39, %40 : vector<16x128xf32>
    %c0_12 = arith.constant 0 : index
    %42 = arith.index_cast %3 : i32 to index
    %c0_13 = arith.constant 0 : index
    %43 = vector.load %arg7[%c0_12, %42, %c0_13] : memref<1x16x128xf32, #tpu.memory_space<vmem>>, vector<1x16x128xf32>
    %44 = vector.shape_cast %43 : vector<1x16x128xf32> to vector<16x128xf32>
    %45 = vector.shape_cast %41 : vector<16x128xf32> to vector<1x16x128xf32>
    tpu.vector_store %arg7[%c0_12, %42, %c0_13], %45 {strides = array<i32>} : memref<1x16x128xf32, #tpu.memory_space<vmem>>, vector<1x16x128xf32>,
    %46 = arith.mulf %36, %10 : vector<16x128xf32>
    %47 = vector.extract_strided_slice %46 {offsets = [0, 0], sizes = [8, 128], strides = [1, 1]} : vector<16x128xf32> to vector<8x128xf32>
    %48 = vector.extract_strided_slice %46 {offsets = [8, 0], sizes = [8, 128], strides = [1, 1]} : vector<16x128xf32> to vector<8x128xf32>
    %49 = arith.addf %47, %48 : vector<8x128xf32>
    %50 = arith.addf %1, %49 : vector<8x128xf32>
    %51 = vector.extract_strided_slice %10 {offsets = [0, 0], sizes = [8, 128], strides = [1, 1]} : vector<16x128xf32> to vector<8x128xf32>
    %52 = vector.extract_strided_slice %10 {offsets = [8, 0], sizes = [8, 128], strides = [1, 1]} : vector<16x128xf32> to vector<8x128xf32>
    %53 = arith.addf %51, %52 : vector<8x128xf32>
    %54 = arith.addf %1, %53 : vector<8x128xf32>
    %c0_14 = arith.constant 0 : index
    %c0_15 = arith.constant 0 : index
    %55 = arith.index_cast %3 : i32 to index
    %c0_16 = arith.constant 0 : index
    %56 = vector.load %arg3[%c0_14, %c0_15, %55, %c0_16] : memref<1x16x16x128xf32, #tpu.memory_space<vmem>>, vector<1x1x16x128xf32>
    %57 = vector.shape_cast %56 : vector<1x1x16x128xf32> to vector<16x128xf32>
    %cst_17 = arith.constant 1.000000e+00 : f32
    %58 = vector.broadcast %cst_17 : f32 to vector<16x128xf32>
    %c0_i32_18 = arith.constant 0 : i32
    %59 = vector.broadcast %c0_i32_18 : i32 to vector<16x128xi32>
    %c0_i32_19 = arith.constant 0 : i32
    %60 = vector.broadcast %c0_i32_19 : i32 to vector<16x128xi32>
    %61 = arith.cmpi eq, %6, %60 : vector<16x128xi32>
    %cst_20 = arith.constant 0.000000e+00 : f32
    %62 = vector.broadcast %cst_20 : f32 to vector<16x128xf32>
    %63 = arith.select %61, %57, %62 : vector<16x128xi1>, vector<16x128xf32>
    %c1 = arith.constant 1 : index
    %64 = memref.load %arg2[%c1] : memref<17xf32, #tpu.memory_space<smem>>
    %cst_21 = arith.constant 0.000000e+00 : f32
    %65 = vector.broadcast %64 : f32 to vector<16x128xf32>
    %66 = vector.broadcast %cst_21 : f32 to vector<16x128xf32>
    %67 = arith.select %61, %65, %66 : vector<16x128xi1>, vector<16x128xf32>
    %c0_22 = arith.constant 0 : index
    %c1_23 = arith.constant 1 : index
    %68 = arith.index_cast %3 : i32 to index
    %c0_24 = arith.constant 0 : index
    %69 = vector.load %arg3[%c0_22, %c1_23, %68, %c0_24] : memref<1x16x16x128xf32, #tpu.memory_space<vmem>>, vector<1x1x16x128xf32>
    %70 = vector.shape_cast %69 : vector<1x1x16x128xf32> to vector<16x128xf32>
    %71 = arith.cmpf ogt, %70, %57 : vector<16x128xf32>
    %72 = arith.maximumf %57, %70 : vector<16x128xf32>
    %c1_i32 = arith.constant 1 : i32
    %73 = vector.broadcast %c1_i32 : i32 to vector<16x128xi32>
    %74 = arith.select %71, %73, %59 : vector<16x128xi1>, vector<16x128xi32>
    %75 = arith.subf %57, %72 : vector<16x128xf32>
    %76 = math.exp %75 : vector<16x128xf32>
    %77 = arith.mulf %58, %76 : vector<16x128xf32>
    %78 = arith.subf %70, %72 : vector<16x128xf32>
    %79 = math.exp %78 : vector<16x128xf32>
    %80 = arith.addf %77, %79 : vector<16x128xf32>
    %c1_i32_25 = arith.constant 1 : i32
    %81 = vector.broadcast %c1_i32_25 : i32 to vector<16x128xi32>
    %82 = arith.cmpi eq, %6, %81 : vector<16x128xi32>
    %83 = arith.select %82, %70, %63 : vector<16x128xi1>, vector<16x128xf32>
    %c2 = arith.constant 2 : index
    %84 = memref.load %arg2[%c2] : memref<17xf32, #tpu.memory_space<smem>>
    %85 = vector.broadcast %84 : f32 to vector<16x128xf32>
    %86 = arith.select %82, %85, %67 : vector<16x128xi1>, vector<16x128xf32>
    %c0_26 = arith.constant 0 : index
    %c2_27 = arith.constant 2 : index
    %87 = arith.index_cast %3 : i32 to index
    %c0_28 = arith.constant 0 : index
    %88 = vector.load %arg3[%c0_26, %c2_27, %87, %c0_28] : memref<1x16x16x128xf32, #tpu.memory_space<vmem>>, vector<1x1x16x128xf32>
    %89 = vector.shape_cast %88 : vector<1x1x16x128xf32> to vector<16x128xf32>
    %90 = arith.cmpf ogt, %89, %72 : vector<16x128xf32>
    %91 = arith.maximumf %72, %89 : vector<16x128xf32>
    %c2_i32 = arith.constant 2 : i32
    %92 = vector.broadcast %c2_i32 : i32 to vector<16x128xi32>
    %93 = arith.select %90, %92, %74 : vector<16x128xi1>, vector<16x128xi32>
    %94 = arith.subf %72, %91 : vector<16x128xf32>
    %95 = math.exp %94 : vector<16x128xf32>
    %96 = arith.mulf %80, %95 : vector<16x128xf32>
    %97 = arith.subf %89, %91 : vector<16x128xf32>
    %98 = math.exp %97 : vector<16x128xf32>
    %99 = arith.addf %96, %98 : vector<16x128xf32>
    %c2_i32_29 = arith.constant 2 : i32
    %100 = vector.broadcast %c2_i32_29 : i32 to vector<16x128xi32>
    %101 = arith.cmpi eq, %6, %100 : vector<16x128xi32>
    %102 = arith.select %101, %89, %83 : vector<16x128xi1>, vector<16x128xf32>
    %c3 = arith.constant 3 : index
    %103 = memref.load %arg2[%c3] : memref<17xf32, #tpu.memory_space<smem>>
    %104 = vector.broadcast %103 : f32 to vector<16x128xf32>
    %105 = arith.select %101, %104, %86 : vector<16x128xi1>, vector<16x128xf32>
    %c0_30 = arith.constant 0 : index
    %c3_31 = arith.constant 3 : index
    %106 = arith.index_cast %3 : i32 to index
    %c0_32 = arith.constant 0 : index
    %107 = vector.load %arg3[%c0_30, %c3_31, %106, %c0_32] : memref<1x16x16x128xf32, #tpu.memory_space<vmem>>, vector<1x1x16x128xf32>
    %108 = vector.shape_cast %107 : vector<1x1x16x128xf32> to vector<16x128xf32>
    %109 = arith.cmpf ogt, %108, %91 : vector<16x128xf32>
    %110 = arith.maximumf %91, %108 : vector<16x128xf32>
    %c3_i32 = arith.constant 3 : i32
    %111 = vector.broadcast %c3_i32 : i32 to vector<16x128xi32>
    %112 = arith.select %109, %111, %93 : vector<16x128xi1>, vector<16x128xi32>
    %113 = arith.subf %91, %110 : vector<16x128xf32>
    %114 = math.exp %113 : vector<16x128xf32>
    %115 = arith.mulf %99, %114 : vector<16x128xf32>
    %116 = arith.subf %108, %110 : vector<16x128xf32>
    %117 = math.exp %116 : vector<16x128xf32>
    %118 = arith.addf %115, %117 : vector<16x128xf32>
    %c3_i32_33 = arith.constant 3 : i32
    %119 = vector.broadcast %c3_i32_33 : i32 to vector<16x128xi32>
    %120 = arith.cmpi eq, %6, %119 : vector<16x128xi32>
    %121 = arith.select %120, %108, %102 : vector<16x128xi1>, vector<16x128xf32>
    %c4 = arith.constant 4 : index
    %122 = memref.load %arg2[%c4] : memref<17xf32, #tpu.memory_space<smem>>
    %123 = vector.broadcast %122 : f32 to vector<16x128xf32>
    %124 = arith.select %120, %123, %105 : vector<16x128xi1>, vector<16x128xf32>
    %c0_34 = arith.constant 0 : index
    %c4_35 = arith.constant 4 : index
    %125 = arith.index_cast %3 : i32 to index
    %c0_36 = arith.constant 0 : index
    %126 = vector.load %arg3[%c0_34, %c4_35, %125, %c0_36] : memref<1x16x16x128xf32, #tpu.memory_space<vmem>>, vector<1x1x16x128xf32>
    %127 = vector.shape_cast %126 : vector<1x1x16x128xf32> to vector<16x128xf32>
    %128 = arith.cmpf ogt, %127, %110 : vector<16x128xf32>
    %129 = arith.maximumf %110, %127 : vector<16x128xf32>
    %c4_i32 = arith.constant 4 : i32
    %130 = vector.broadcast %c4_i32 : i32 to vector<16x128xi32>
    %131 = arith.select %128, %130, %112 : vector<16x128xi1>, vector<16x128xi32>
    %132 = arith.subf %110, %129 : vector<16x128xf32>
    %133 = math.exp %132 : vector<16x128xf32>
    %134 = arith.mulf %118, %133 : vector<16x128xf32>
    %135 = arith.subf %127, %129 : vector<16x128xf32>
    %136 = math.exp %135 : vector<16x128xf32>
    %137 = arith.addf %134, %136 : vector<16x128xf32>
    %c4_i32_37 = arith.constant 4 : i32
    %138 = vector.broadcast %c4_i32_37 : i32 to vector<16x128xi32>
    %139 = arith.cmpi eq, %6, %138 : vector<16x128xi32>
    %140 = arith.select %139, %127, %121 : vector<16x128xi1>, vector<16x128xf32>
    %c5 = arith.constant 5 : index
    %141 = memref.load %arg2[%c5] : memref<17xf32, #tpu.memory_space<smem>>
    %142 = vector.broadcast %141 : f32 to vector<16x128xf32>
    %143 = arith.select %139, %142, %124 : vector<16x128xi1>, vector<16x128xf32>
    %c0_38 = arith.constant 0 : index
    %c5_39 = arith.constant 5 : index
    %144 = arith.index_cast %3 : i32 to index
    %c0_40 = arith.constant 0 : index
    %145 = vector.load %arg3[%c0_38, %c5_39, %144, %c0_40] : memref<1x16x16x128xf32, #tpu.memory_space<vmem>>, vector<1x1x16x128xf32>
    %146 = vector.shape_cast %145 : vector<1x1x16x128xf32> to vector<16x128xf32>
    %147 = arith.cmpf ogt, %146, %129 : vector<16x128xf32>
    %148 = arith.maximumf %129, %146 : vector<16x128xf32>
    %c5_i32 = arith.constant 5 : i32
    %149 = vector.broadcast %c5_i32 : i32 to vector<16x128xi32>
    %150 = arith.select %147, %149, %131 : vector<16x128xi1>, vector<16x128xi32>
    %151 = arith.subf %129, %148 : vector<16x128xf32>
    %152 = math.exp %151 : vector<16x128xf32>
    %153 = arith.mulf %137, %152 : vector<16x128xf32>
    %154 = arith.subf %146, %148 : vector<16x128xf32>
    %155 = math.exp %154 : vector<16x128xf32>
    %156 = arith.addf %153, %155 : vector<16x128xf32>
    %c5_i32_41 = arith.constant 5 : i32
    %157 = vector.broadcast %c5_i32_41 : i32 to vector<16x128xi32>
    %158 = arith.cmpi eq, %6, %157 : vector<16x128xi32>
    %159 = arith.select %158, %146, %140 : vector<16x128xi1>, vector<16x128xf32>
    %c6 = arith.constant 6 : index
    %160 = memref.load %arg2[%c6] : memref<17xf32, #tpu.memory_space<smem>>
    %161 = vector.broadcast %160 : f32 to vector<16x128xf32>
    %162 = arith.select %158, %161, %143 : vector<16x128xi1>, vector<16x128xf32>
    %c0_42 = arith.constant 0 : index
    %c6_43 = arith.constant 6 : index
    %163 = arith.index_cast %3 : i32 to index
    %c0_44 = arith.constant 0 : index
    %164 = vector.load %arg3[%c0_42, %c6_43, %163, %c0_44] : memref<1x16x16x128xf32, #tpu.memory_space<vmem>>, vector<1x1x16x128xf32>
    %165 = vector.shape_cast %164 : vector<1x1x16x128xf32> to vector<16x128xf32>
    %166 = arith.cmpf ogt, %165, %148 : vector<16x128xf32>
    %167 = arith.maximumf %148, %165 : vector<16x128xf32>
    %c6_i32 = arith.constant 6 : i32
    %168 = vector.broadcast %c6_i32 : i32 to vector<16x128xi32>
    %169 = arith.select %166, %168, %150 : vector<16x128xi1>, vector<16x128xi32>
    %170 = arith.subf %148, %167 : vector<16x128xf32>
    %171 = math.exp %170 : vector<16x128xf32>
    %172 = arith.mulf %156, %171 : vector<16x128xf32>
    %173 = arith.subf %165, %167 : vector<16x128xf32>
    %174 = math.exp %173 : vector<16x128xf32>
    %175 = arith.addf %172, %174 : vector<16x128xf32>
    %c6_i32_45 = arith.constant 6 : i32
    %176 = vector.broadcast %c6_i32_45 : i32 to vector<16x128xi32>
    %177 = arith.cmpi eq, %6, %176 : vector<16x128xi32>
    %178 = arith.select %177, %165, %159 : vector<16x128xi1>, vector<16x128xf32>
    %c7 = arith.constant 7 : index
    %179 = memref.load %arg2[%c7] : memref<17xf32, #tpu.memory_space<smem>>
    %180 = vector.broadcast %179 : f32 to vector<16x128xf32>
    %181 = arith.select %177, %180, %162 : vector<16x128xi1>, vector<16x128xf32>
    %c0_46 = arith.constant 0 : index
    %c7_47 = arith.constant 7 : index
    %182 = arith.index_cast %3 : i32 to index
    %c0_48 = arith.constant 0 : index
    %183 = vector.load %arg3[%c0_46, %c7_47, %182, %c0_48] : memref<1x16x16x128xf32, #tpu.memory_space<vmem>>, vector<1x1x16x128xf32>
    %184 = vector.shape_cast %183 : vector<1x1x16x128xf32> to vector<16x128xf32>
    %185 = arith.cmpf ogt, %184, %167 : vector<16x128xf32>
    %186 = arith.maximumf %167, %184 : vector<16x128xf32>
    %c7_i32 = arith.constant 7 : i32
    %187 = vector.broadcast %c7_i32 : i32 to vector<16x128xi32>
    %188 = arith.select %185, %187, %169 : vector<16x128xi1>, vector<16x128xi32>
    %189 = arith.subf %167, %186 : vector<16x128xf32>
    %190 = math.exp %189 : vector<16x128xf32>
    %191 = arith.mulf %175, %190 : vector<16x128xf32>
    %192 = arith.subf %184, %186 : vector<16x128xf32>
    %193 = math.exp %192 : vector<16x128xf32>
    %194 = arith.addf %191, %193 : vector<16x128xf32>
    %c7_i32_49 = arith.constant 7 : i32
    %195 = vector.broadcast %c7_i32_49 : i32 to vector<16x128xi32>
    %196 = arith.cmpi eq, %6, %195 : vector<16x128xi32>
    %197 = arith.select %196, %184, %178 : vector<16x128xi1>, vector<16x128xf32>
    %c8 = arith.constant 8 : index
    %198 = memref.load %arg2[%c8] : memref<17xf32, #tpu.memory_space<smem>>
    %199 = vector.broadcast %198 : f32 to vector<16x128xf32>
    %200 = arith.select %196, %199, %181 : vector<16x128xi1>, vector<16x128xf32>
    %c0_50 = arith.constant 0 : index
    %c8_51 = arith.constant 8 : index
    %201 = arith.index_cast %3 : i32 to index
    %c0_52 = arith.constant 0 : index
    %202 = vector.load %arg3[%c0_50, %c8_51, %201, %c0_52] : memref<1x16x16x128xf32, #tpu.memory_space<vmem>>, vector<1x1x16x128xf32>
    %203 = vector.shape_cast %202 : vector<1x1x16x128xf32> to vector<16x128xf32>
    %204 = arith.cmpf ogt, %203, %186 : vector<16x128xf32>
    %205 = arith.maximumf %186, %203 : vector<16x128xf32>
    %c8_i32 = arith.constant 8 : i32
    %206 = vector.broadcast %c8_i32 : i32 to vector<16x128xi32>
    %207 = arith.select %204, %206, %188 : vector<16x128xi1>, vector<16x128xi32>
    %208 = arith.subf %186, %205 : vector<16x128xf32>
    %209 = math.exp %208 : vector<16x128xf32>
    %210 = arith.mulf %194, %209 : vector<16x128xf32>
    %211 = arith.subf %203, %205 : vector<16x128xf32>
    %212 = math.exp %211 : vector<16x128xf32>
    %213 = arith.addf %210, %212 : vector<16x128xf32>
    %c8_i32_53 = arith.constant 8 : i32
    %214 = vector.broadcast %c8_i32_53 : i32 to vector<16x128xi32>
    %215 = arith.cmpi eq, %6, %214 : vector<16x128xi32>
    %216 = arith.select %215, %203, %197 : vector<16x128xi1>, vector<16x128xf32>
    %c9 = arith.constant 9 : index
    %217 = memref.load %arg2[%c9] : memref<17xf32, #tpu.memory_space<smem>>
    %218 = vector.broadcast %217 : f32 to vector<16x128xf32>
    %219 = arith.select %215, %218, %200 : vector<16x128xi1>, vector<16x128xf32>
    %c0_54 = arith.constant 0 : index
    %c9_55 = arith.constant 9 : index
    %220 = arith.index_cast %3 : i32 to index
    %c0_56 = arith.constant 0 : index
    %221 = vector.load %arg3[%c0_54, %c9_55, %220, %c0_56] : memref<1x16x16x128xf32, #tpu.memory_space<vmem>>, vector<1x1x16x128xf32>
    %222 = vector.shape_cast %221 : vector<1x1x16x128xf32> to vector<16x128xf32>
    %223 = arith.cmpf ogt, %222, %205 : vector<16x128xf32>
    %224 = arith.maximumf %205, %222 : vector<16x128xf32>
    %c9_i32 = arith.constant 9 : i32
    %225 = vector.broadcast %c9_i32 : i32 to vector<16x128xi32>
    %226 = arith.select %223, %225, %207 : vector<16x128xi1>, vector<16x128xi32>
    %227 = arith.subf %205, %224 : vector<16x128xf32>
    %228 = math.exp %227 : vector<16x128xf32>
    %229 = arith.mulf %213, %228 : vector<16x128xf32>
    %230 = arith.subf %222, %224 : vector<16x128xf32>
    %231 = math.exp %230 : vector<16x128xf32>
    %232 = arith.addf %229, %231 : vector<16x128xf32>
    %c9_i32_57 = arith.constant 9 : i32
    %233 = vector.broadcast %c9_i32_57 : i32 to vector<16x128xi32>
    %234 = arith.cmpi eq, %6, %233 : vector<16x128xi32>
    %235 = arith.select %234, %222, %216 : vector<16x128xi1>, vector<16x128xf32>
    %c10 = arith.constant 10 : index
    %236 = memref.load %arg2[%c10] : memref<17xf32, #tpu.memory_space<smem>>
    %237 = vector.broadcast %236 : f32 to vector<16x128xf32>
    %238 = arith.select %234, %237, %219 : vector<16x128xi1>, vector<16x128xf32>
    %c0_58 = arith.constant 0 : index
    %c10_59 = arith.constant 10 : index
    %239 = arith.index_cast %3 : i32 to index
    %c0_60 = arith.constant 0 : index
    %240 = vector.load %arg3[%c0_58, %c10_59, %239, %c0_60] : memref<1x16x16x128xf32, #tpu.memory_space<vmem>>, vector<1x1x16x128xf32>
    %241 = vector.shape_cast %240 : vector<1x1x16x128xf32> to vector<16x128xf32>
    %242 = arith.cmpf ogt, %241, %224 : vector<16x128xf32>
    %243 = arith.maximumf %224, %241 : vector<16x128xf32>
    %c10_i32 = arith.constant 10 : i32
    %244 = vector.broadcast %c10_i32 : i32 to vector<16x128xi32>
    %245 = arith.select %242, %244, %226 : vector<16x128xi1>, vector<16x128xi32>
    %246 = arith.subf %224, %243 : vector<16x128xf32>
    %247 = math.exp %246 : vector<16x128xf32>
    %248 = arith.mulf %232, %247 : vector<16x128xf32>
    %249 = arith.subf %241, %243 : vector<16x128xf32>
    %250 = math.exp %249 : vector<16x128xf32>
    %251 = arith.addf %248, %250 : vector<16x128xf32>
    %c10_i32_61 = arith.constant 10 : i32
    %252 = vector.broadcast %c10_i32_61 : i32 to vector<16x128xi32>
    %253 = arith.cmpi eq, %6, %252 : vector<16x128xi32>
    %254 = arith.select %253, %241, %235 : vector<16x128xi1>, vector<16x128xf32>
    %c11 = arith.constant 11 : index
    %255 = memref.load %arg2[%c11] : memref<17xf32, #tpu.memory_space<smem>>
    %256 = vector.broadcast %255 : f32 to vector<16x128xf32>
    %257 = arith.select %253, %256, %238 : vector<16x128xi1>, vector<16x128xf32>
    %c0_62 = arith.constant 0 : index
    %c11_63 = arith.constant 11 : index
    %258 = arith.index_cast %3 : i32 to index
    %c0_64 = arith.constant 0 : index
    %259 = vector.load %arg3[%c0_62, %c11_63, %258, %c0_64] : memref<1x16x16x128xf32, #tpu.memory_space<vmem>>, vector<1x1x16x128xf32>
    %260 = vector.shape_cast %259 : vector<1x1x16x128xf32> to vector<16x128xf32>
    %261 = arith.cmpf ogt, %260, %243 : vector<16x128xf32>
    %262 = arith.maximumf %243, %260 : vector<16x128xf32>
    %c11_i32 = arith.constant 11 : i32
    %263 = vector.broadcast %c11_i32 : i32 to vector<16x128xi32>
    %264 = arith.select %261, %263, %245 : vector<16x128xi1>, vector<16x128xi32>
    %265 = arith.subf %243, %262 : vector<16x128xf32>
    %266 = math.exp %265 : vector<16x128xf32>
    %267 = arith.mulf %251, %266 : vector<16x128xf32>
    %268 = arith.subf %260, %262 : vector<16x128xf32>
    %269 = math.exp %268 : vector<16x128xf32>
    %270 = arith.addf %267, %269 : vector<16x128xf32>
    %c11_i32_65 = arith.constant 11 : i32
    %271 = vector.broadcast %c11_i32_65 : i32 to vector<16x128xi32>
    %272 = arith.cmpi eq, %6, %271 : vector<16x128xi32>
    %273 = arith.select %272, %260, %254 : vector<16x128xi1>, vector<16x128xf32>
    %c12 = arith.constant 12 : index
    %274 = memref.load %arg2[%c12] : memref<17xf32, #tpu.memory_space<smem>>
    %275 = vector.broadcast %274 : f32 to vector<16x128xf32>
    %276 = arith.select %272, %275, %257 : vector<16x128xi1>, vector<16x128xf32>
    %c0_66 = arith.constant 0 : index
    %c12_67 = arith.constant 12 : index
    %277 = arith.index_cast %3 : i32 to index
    %c0_68 = arith.constant 0 : index
    %278 = vector.load %arg3[%c0_66, %c12_67, %277, %c0_68] : memref<1x16x16x128xf32, #tpu.memory_space<vmem>>, vector<1x1x16x128xf32>
    %279 = vector.shape_cast %278 : vector<1x1x16x128xf32> to vector<16x128xf32>
    %280 = arith.cmpf ogt, %279, %262 : vector<16x128xf32>
    %281 = arith.maximumf %262, %279 : vector<16x128xf32>
    %c12_i32 = arith.constant 12 : i32
    %282 = vector.broadcast %c12_i32 : i32 to vector<16x128xi32>
    %283 = arith.select %280, %282, %264 : vector<16x128xi1>, vector<16x128xi32>
    %284 = arith.subf %262, %281 : vector<16x128xf32>
    %285 = math.exp %284 : vector<16x128xf32>
    %286 = arith.mulf %270, %285 : vector<16x128xf32>
    %287 = arith.subf %279, %281 : vector<16x128xf32>
    %288 = math.exp %287 : vector<16x128xf32>
    %289 = arith.addf %286, %288 : vector<16x128xf32>
    %c12_i32_69 = arith.constant 12 : i32
    %290 = vector.broadcast %c12_i32_69 : i32 to vector<16x128xi32>
    %291 = arith.cmpi eq, %6, %290 : vector<16x128xi32>
    %292 = arith.select %291, %279, %273 : vector<16x128xi1>, vector<16x128xf32>
    %c13 = arith.constant 13 : index
    %293 = memref.load %arg2[%c13] : memref<17xf32, #tpu.memory_space<smem>>
    %294 = vector.broadcast %293 : f32 to vector<16x128xf32>
    %295 = arith.select %291, %294, %276 : vector<16x128xi1>, vector<16x128xf32>
    %c0_70 = arith.constant 0 : index
    %c13_71 = arith.constant 13 : index
    %296 = arith.index_cast %3 : i32 to index
    %c0_72 = arith.constant 0 : index
    %297 = vector.load %arg3[%c0_70, %c13_71, %296, %c0_72] : memref<1x16x16x128xf32, #tpu.memory_space<vmem>>, vector<1x1x16x128xf32>
    %298 = vector.shape_cast %297 : vector<1x1x16x128xf32> to vector<16x128xf32>
    %299 = arith.cmpf ogt, %298, %281 : vector<16x128xf32>
    %300 = arith.maximumf %281, %298 : vector<16x128xf32>
    %c13_i32 = arith.constant 13 : i32
    %301 = vector.broadcast %c13_i32 : i32 to vector<16x128xi32>
    %302 = arith.select %299, %301, %283 : vector<16x128xi1>, vector<16x128xi32>
    %303 = arith.subf %281, %300 : vector<16x128xf32>
    %304 = math.exp %303 : vector<16x128xf32>
    %305 = arith.mulf %289, %304 : vector<16x128xf32>
    %306 = arith.subf %298, %300 : vector<16x128xf32>
    %307 = math.exp %306 : vector<16x128xf32>
    %308 = arith.addf %305, %307 : vector<16x128xf32>
    %c13_i32_73 = arith.constant 13 : i32
    %309 = vector.broadcast %c13_i32_73 : i32 to vector<16x128xi32>
    %310 = arith.cmpi eq, %6, %309 : vector<16x128xi32>
    %311 = arith.select %310, %298, %292 : vector<16x128xi1>, vector<16x128xf32>
    %c14 = arith.constant 14 : index
    %312 = memref.load %arg2[%c14] : memref<17xf32, #tpu.memory_space<smem>>
    %313 = vector.broadcast %312 : f32 to vector<16x128xf32>
    %314 = arith.select %310, %313, %295 : vector<16x128xi1>, vector<16x128xf32>
    %c0_74 = arith.constant 0 : index
    %c14_75 = arith.constant 14 : index
    %315 = arith.index_cast %3 : i32 to index
    %c0_76 = arith.constant 0 : index
    %316 = vector.load %arg3[%c0_74, %c14_75, %315, %c0_76] : memref<1x16x16x128xf32, #tpu.memory_space<vmem>>, vector<1x1x16x128xf32>
    %317 = vector.shape_cast %316 : vector<1x1x16x128xf32> to vector<16x128xf32>
    %318 = arith.cmpf ogt, %317, %300 : vector<16x128xf32>
    %319 = arith.maximumf %300, %317 : vector<16x128xf32>
    %c14_i32 = arith.constant 14 : i32
    %320 = vector.broadcast %c14_i32 : i32 to vector<16x128xi32>
    %321 = arith.select %318, %320, %302 : vector<16x128xi1>, vector<16x128xi32>
    %322 = arith.subf %300, %319 : vector<16x128xf32>
    %323 = math.exp %322 : vector<16x128xf32>
    %324 = arith.mulf %308, %323 : vector<16x128xf32>
    %325 = arith.subf %317, %319 : vector<16x128xf32>
    %326 = math.exp %325 : vector<16x128xf32>
    %327 = arith.addf %324, %326 : vector<16x128xf32>
    %c14_i32_77 = arith.constant 14 : i32
    %328 = vector.broadcast %c14_i32_77 : i32 to vector<16x128xi32>
    %329 = arith.cmpi eq, %6, %328 : vector<16x128xi32>
    %330 = arith.select %329, %317, %311 : vector<16x128xi1>, vector<16x128xf32>
    %c15 = arith.constant 15 : index
    %331 = memref.load %arg2[%c15] : memref<17xf32, #tpu.memory_space<smem>>
    %332 = vector.broadcast %331 : f32 to vector<16x128xf32>
    %333 = arith.select %329, %332, %314 : vector<16x128xi1>, vector<16x128xf32>
    %c0_78 = arith.constant 0 : index
    %c15_79 = arith.constant 15 : index
    %334 = arith.index_cast %3 : i32 to index
    %c0_80 = arith.constant 0 : index
    %335 = vector.load %arg3[%c0_78, %c15_79, %334, %c0_80] : memref<1x16x16x128xf32, #tpu.memory_space<vmem>>, vector<1x1x16x128xf32>
    %336 = vector.shape_cast %335 : vector<1x1x16x128xf32> to vector<16x128xf32>
    %337 = arith.cmpf ogt, %336, %319 : vector<16x128xf32>
    %338 = arith.maximumf %319, %336 : vector<16x128xf32>
    %c15_i32 = arith.constant 15 : i32
    %339 = vector.broadcast %c15_i32 : i32 to vector<16x128xi32>
    %340 = arith.select %337, %339, %321 : vector<16x128xi1>, vector<16x128xi32>
    %341 = arith.subf %319, %338 : vector<16x128xf32>
    %342 = math.exp %341 : vector<16x128xf32>
    %343 = arith.mulf %327, %342 : vector<16x128xf32>
    %344 = arith.subf %336, %338 : vector<16x128xf32>
    %345 = math.exp %344 : vector<16x128xf32>
    %346 = arith.addf %343, %345 : vector<16x128xf32>
    %c15_i32_81 = arith.constant 15 : i32
    %347 = vector.broadcast %c15_i32_81 : i32 to vector<16x128xi32>
    %348 = arith.cmpi eq, %6, %347 : vector<16x128xi32>
    %349 = arith.select %348, %336, %330 : vector<16x128xi1>, vector<16x128xf32>
    %c16 = arith.constant 16 : index
    %350 = memref.load %arg2[%c16] : memref<17xf32, #tpu.memory_space<smem>>
    %351 = vector.broadcast %350 : f32 to vector<16x128xf32>
    %352 = arith.select %348, %351, %333 : vector<16x128xi1>, vector<16x128xf32>
    %353 = math.log %346 : vector<16x128xf32>
    %354 = arith.addf %338, %353 : vector<16x128xf32>
    %c255_i32_82 = arith.constant 255 : i32
    %355 = vector.broadcast %c255_i32_82 : i32 to vector<16x128xi32>
    %356 = arith.cmpi eq, %6, %355 : vector<16x128xi32>
    %357 = arith.subf %354, %349 : vector<16x128xf32>
    %358 = arith.mulf %352, %357 : vector<16x128xf32>
    %cst_83 = arith.constant 0.000000e+00 : f32
    %359 = vector.broadcast %cst_83 : f32 to vector<16x128xf32>
    %360 = arith.select %356, %359, %358 : vector<16x128xi1>, vector<16x128xf32>
    %c0_84 = arith.constant 0 : index
    %361 = arith.index_cast %3 : i32 to index
    %c0_85 = arith.constant 0 : index
    %362 = vector.load %arg8[%c0_84, %361, %c0_85] : memref<1x16x128xi32, #tpu.memory_space<vmem>>, vector<1x16x128xi32>
    %363 = vector.shape_cast %362 : vector<1x16x128xi32> to vector<16x128xi32>
    %364 = vector.shape_cast %340 : vector<16x128xi32> to vector<1x16x128xi32>
    tpu.vector_store %arg8[%c0_84, %361, %c0_85], %364 {strides = array<i32>} : memref<1x16x128xi32, #tpu.memory_space<vmem>>, vector<1x16x128xi32>,
    %365 = vector.extract_strided_slice %360 {offsets = [0, 0], sizes = [8, 128], strides = [1, 1]} : vector<16x128xf32> to vector<8x128xf32>
    %366 = vector.extract_strided_slice %360 {offsets = [8, 0], sizes = [8, 128], strides = [1, 1]} : vector<16x128xf32> to vector<8x128xf32>
    %367 = arith.addf %365, %366 : vector<8x128xf32>
    %368 = arith.addf %1, %367 : vector<8x128xf32>
    %c1_i32_86 = arith.constant 1 : i32
    %c0_87 = arith.constant 0 : index
    %c0_88 = arith.constant 0 : index
    %c0_89 = arith.constant 0 : index
    %c0_90 = arith.constant 0 : index
    %c0_91 = arith.constant 0 : index
    %369 = vector.load %arg9[%c0_87, %c0_88, %c0_89, %c0_90, %c0_91] : memref<1x1x4x8x128xf32, #tpu.memory_space<vmem>>, vector<1x1x1x8x128xf32>
    %370 = vector.shape_cast %369 : vector<1x1x1x8x128xf32> to vector<8x128xf32>
    %371 = vector.shape_cast %50 : vector<8x128xf32> to vector<1x1x1x8x128xf32>
    tpu.vector_store %arg9[%c0_87, %c0_88, %c0_89, %c0_90, %c0_91], %371 {strides = array<i32>} : memref<1x1x4x8x128xf32, #tpu.memory_space<vmem>>, vector<1x1x1x8x128xf32>,
    %c0_92 = arith.constant 0 : index
    %c0_93 = arith.constant 0 : index
    %c1_94 = arith.constant 1 : index
    %c0_95 = arith.constant 0 : index
    %c0_96 = arith.constant 0 : index
    %372 = vector.load %arg9[%c0_92, %c0_93, %c1_94, %c0_95, %c0_96] : memref<1x1x4x8x128xf32, #tpu.memory_space<vmem>>, vector<1x1x1x8x128xf32>
    %373 = vector.shape_cast %372 : vector<1x1x1x8x128xf32> to vector<8x128xf32>
    %374 = vector.shape_cast %54 : vector<8x128xf32> to vector<1x1x1x8x128xf32>
    tpu.vector_store %arg9[%c0_92, %c0_93, %c1_94, %c0_95, %c0_96], %374 {strides = array<i32>} : memref<1x1x4x8x128xf32, #tpu.memory_space<vmem>>, vector<1x1x1x8x128xf32>,
    %c0_97 = arith.constant 0 : index
    %c0_98 = arith.constant 0 : index
    %c2_99 = arith.constant 2 : index
    %c0_100 = arith.constant 0 : index
    %c0_101 = arith.constant 0 : index
    %375 = vector.load %arg9[%c0_97, %c0_98, %c2_99, %c0_100, %c0_101] : memref<1x1x4x8x128xf32, #tpu.memory_space<vmem>>, vector<1x1x1x8x128xf32>
    %376 = vector.shape_cast %375 : vector<1x1x1x8x128xf32> to vector<8x128xf32>
    %377 = vector.shape_cast %368 : vector<8x128xf32> to vector<1x1x1x8x128xf32>
    tpu.vector_store %arg9[%c0_97, %c0_98, %c2_99, %c0_100, %c0_101], %377 {strides = array<i32>} : memref<1x1x4x8x128xf32, #tpu.memory_space<vmem>>, vector<1x1x1x8x128xf32>,
    %c0_102 = arith.constant 0 : index
    %c0_103 = arith.constant 0 : index
    %c3_104 = arith.constant 3 : index
    %c0_105 = arith.constant 0 : index
    %c0_106 = arith.constant 0 : index
    %378 = vector.load %arg9[%c0_102, %c0_103, %c3_104, %c0_105, %c0_106] : memref<1x1x4x8x128xf32, #tpu.memory_space<vmem>>, vector<1x1x1x8x128xf32>
    %379 = vector.shape_cast %378 : vector<1x1x1x8x128xf32> to vector<8x128xf32>
    %380 = vector.shape_cast %1 : vector<8x128xf32> to vector<1x1x1x8x128xf32>
    tpu.vector_store %arg9[%c0_102, %c0_103, %c3_104, %c0_105, %c0_106], %380 {strides = array<i32>} : memref<1x1x4x8x128xf32, #tpu.memory_space<vmem>>, vector<1x1x1x8x128xf32>,
    return
  }
  func.func @transform_0(%arg0: i32, %arg1: i32) -> i32 {
    %c0_i32 = arith.constant 0 : i32
    %c0_i32_0 = arith.constant 0 : i32
    return %c0_i32 : i32
  }
  func.func @transform_1(%arg0: i32, %arg1: i32) -> (i32, i32, i32, i32) {
    %c0_i32 = arith.constant 0 : i32
    %c0_i32_0 = arith.constant 0 : i32
    %c0_i32_1 = arith.constant 0 : i32
    return %arg0, %c0_i32, %arg1, %c0_i32_0 : i32, i32, i32, i32
  }
  func.func @transform_2(%arg0: i32, %arg1: i32) -> (i32, i32, i32) {
    %c0_i32 = arith.constant 0 : i32
    %c0_i32_0 = arith.constant 0 : i32
    return %arg0, %arg1, %c0_i32 : i32, i32, i32
  }
  func.func @transform_3(%arg0: i32, %arg1: i32) -> (i32, i32, i32) {
    %c0_i32 = arith.constant 0 : i32
    %c0_i32_0 = arith.constant 0 : i32
    return %arg0, %arg1, %c0_i32 : i32, i32, i32
  }
  func.func @transform_4(%arg0: i32, %arg1: i32) -> (i32, i32, i32) {
    %c0_i32 = arith.constant 0 : i32
    %c0_i32_0 = arith.constant 0 : i32
    return %arg0, %arg1, %c0_i32 : i32, i32, i32
  }
  func.func @transform_5(%arg0: i32, %arg1: i32) -> (i32, i32, i32) {
    %c0_i32 = arith.constant 0 : i32
    %c0_i32_0 = arith.constant 0 : i32
    return %arg0, %arg1, %c0_i32 : i32, i32, i32
  }
  func.func @transform_6(%arg0: i32, %arg1: i32) -> (i32, i32, i32) {
    %c0_i32 = arith.constant 0 : i32
    %c0_i32_0 = arith.constant 0 : i32
    return %arg0, %arg1, %c0_i32 : i32, i32, i32
  }
  func.func @transform_7(%arg0: i32, %arg1: i32) -> (i32, i32, i32, i32, i32) {
    %c0_i32 = arith.constant 0 : i32
    %c0_i32_0 = arith.constant 0 : i32
    %c0_i32_1 = arith.constant 0 : i32
    %c0_i32_2 = arith.constant 0 : i32
    return %arg0, %arg1, %c0_i32, %c0_i32_0, %c0_i32_1 : i32, i32, i32, i32, i32
  }
}

</mosaic_0001>

<bundles_post_ra>
// kernel: tpu_custom_call.1
= control target key start
LH: loop header
LB: loop body
LE: loop exit
PB: predicated region body
PF: predicated region fallthrough
CT: control target
= control target key end

     0   :  { %s3145_s0 = inlined_call_operand.hbm [shape: f32[17], index: 0, kind: input, shape index: {}]   ;;  %s3146_s1 = inlined_call_operand.hbm [shape: f32[2,16,16,128], index: 1, kind: input, shape index: {}]   ;;  %s3147_s2 = inlined_call_operand.hbm [shape: f32[2,16,128], index: 2, kind: input, shape index: {}]   ;;  %s3148_s3 = inlined_call_operand.hbm [shape: f32[2,16,128], index: 3, kind: input, shape index: {}]   ;;  %s3149_s4 = inlined_call_operand.hbm [shape: s32[2,16,128], index: 4, kind: input, shape index: {}]   ;;  %s3150_s5 = inlined_call_operand.hbm [shape: f32[2,16,128], index: 5, kind: output, shape index: {0}]   ;;  %s3151_s6 = inlined_call_operand.hbm [shape: s32[2,16,128], index: 6, kind: output, shape index: {1}]   ;;  %s3152_s7 = inlined_call_operand.hbm [shape: f32[2,1,4,8,128], index: 7, kind: output, shape index: {2}]  }
   0x1   :  { %3174 = sst [smem:[#allocation29_spill]] %s3146_s1 }
   0x2   :  { %3175 = sst [smem:[#allocation30_spill]] %s3147_s2 }
   0x3   :  { %3176 = sst [smem:[#allocation31_spill]] %s3152_s7 }
   0x4   :  { %13 = vsyncpa [#allocation5], 0 }
   0x5   :  { %14 = vsyncpa [#allocation3], 0 }
   0x6   :  { %16 = vsyncpa [#allocation3 + $0x1], 0 }
   0x7   :  { %17 = vsyncpa [#allocation8], 0 }
   0x8   :  { %19 = vsyncpa [#allocation8 + $0x1], 0 }
   0x9   :  { %20 = vsyncpa [#allocation11], 0 }
   0xa   :  { %22 = vsyncpa [#allocation11 + $0x1], 0 }
   0xb   :  { %23 = vsyncpa [#allocation4], 0 }
   0xc   :  { %25 = vsyncpa [#allocation4 + $0x1], 0 }
   0xd   :  { %26 = vsyncpa [#allocation14], 0 }
   0xe   :  { %28 = vsyncpa [#allocation14 + $0x1], 0  ;;  %s2110_s24 = smov 0   ;;  %s2112_s25 = smov 0  }
   0xf   :  { %s2114_s26 = smov 0   ;;  %s2116_s27 = smov 0  }
  0x10   :  { %s2118_s28 = smov 0   ;;  %s2120_s29 = smov 0  }
  0x11 LB: > { %3177 = sst [smem:[#allocation22_spill]] %s2034_s24  ;;  %s46_s30 = sadd.s32 1, %s2050_s28  ;;  %s2054_s29 = sphi %s2120_s29, %s34_s29   ;;  %s2050_s28 = sphi %s2118_s28, %s3219_s28   ;;  %s2046_s27 = sphi %s2116_s27, %s3218_s27   ;;  %s2042_s26 = sphi %s2114_s26, %s3217_s26   ;;  %s2038_s25 = sphi %s2112_s25, %s3221_s25   ;;  %s2034_s24 = sphi %s2110_s24, %s3220_s24  }
  0x12   : > { %3178 = sst [smem:[#allocation23_spill]] %s2042_s26  ;;  %s76_s8 = sadd.s32 1, %s2042_s26 }
  0x13   : > { %3179 = sst [smem:[#allocation24_spill]] %s2050_s28  ;;  %p48_p0 = scmp.ge.s32.totalorder %s46_s30, 2 }
  0x14   : > { %3180 = sst [smem:[#allocation25_spill]] %s2054_s29  ;;  %p3153_p1 = scmp.ne.s32.totalorder %s2042_s26, %s2038_s25 }
  0x15   : > { %p84_p2 = scmp.eq.s32.totalorder %s2054_s29, 0  ;;  %s3223_s30 = smov (%p48_p0, %s46_s30), 0 }
  0x16   : > { %3181 = sst [smem:[#allocation26_spill]] %s3223_s30  ;;  %p1568_p5 = scmp.lt.s32.totalorder %s2054_s29, 2 }
  0x17   : > { %p85_p4 = por %p84_p2, %p3153_p1  ;;  %s71_s9 = ssub.s32 %s2050_s28, %s3223_s30 }
  0x18   : > { %s2155_s10 = sand.u32 1, %s2042_s26   ;;  %p74_p6 = scmp.eq.s32.totalorder %s71_s9, 0 }
  0x19   : > { %p2157_p7 = pnand %p1568_p5, %p85_p4  ;;  %s313_s13 = sand.u32 1, %s2054_s29  }
  0x1a   : > { %s2162_s12 = scalar_select %p74_p6, %s2042_s26, %s76_s8  }
  0x1b   : > { %s2166_s14 = sshll.u32 %s2155_s10, 4  ;;  %s2169_s15 = sshll.u32 %s2050_s28, 8 }
  0x1c   : > { %3183 = sst [smem:[#allocation27_spill]] %s2162_s12  ;;  %s3184_s2 = sld [smem:[#allocation30_spill]] }
  0x1d   : > { %s317_s19 = scalar_lea.vmem [#allocation7], %s2166_s14  ;;  %s2180_s21 = scalar_lea.sflag [#allocation8], %s313_s13 }
  0x1e   : > { %s326_s20 = sshll.u32 %s317_s19, 4  ;;  %p2186_p9 = pneg %p2157_p7  ;;  %s2178_s20 = int_to_ptr.vmem [resolvable:$true] %s326_s20 }
  0x22   : > { %s2175_s18 = scalar_lea.hbm %s3184_s2, %s2169_s15  ;;  %s1772_s16 = scalar_lea.hbm %s3184_s2, 512 }
  0x23   : > { %s1767_s22 = scalar_lea.hbm %s2175_s18, 256  ;;  %p1773_p12 = scmp.lt.u32.totalorder %s2175_s18, %s3184_s2 }
  0x24   : > { %p1768_p8 = scmp.ne.s32.totalorder %s2175_s18, %s1767_s22  ;;  %p1774_p13 = scmp.lt.u32.totalorder %s1772_s16, %s1767_s22 }
  0x25   : > { %p1776_p2 = scmp.lt.u32.totalorder %s1767_s22, %s2175_s18 }
  0x26   : > { %p1770_p10 = pnand %p2186_p9, %p1768_p8  ;;  %p1775_p0 = por %p1774_p13, %p1773_p12 }
  0x28   : > { %p1771_p11 = pneg %p1770_p10  ;;  %p1777_p4 = por %p1776_p2, %p1775_p0 }
  0x2a   : > { %p1778_p5 = pnand %p1777_p4, %p1771_p11 }
  0x2c   : > { %1781 = shalt.err (!%p1778_p5)
}
  0x2d   : > { %s1782_s13 = scalar_lea.vmem %s2178_s20, 256  ;;  %s2056_s8 = smov [#allocation7]  }
  0x2e   : > { %p1783_p6 = scmp.ne.s32.totalorder %s2178_s20, %s1782_s13  ;;  %s1787_s9 = sshll.u32 %s2056_s8, 4  ;;  %s1788_s9 = int_to_ptr.vmem [resolvable:$false] %s1787_s9 }
  0x2f   : > { %s1789_s17 = scalar_lea.vmem %s1788_s9, 512  ;;  %p1790_p3 = scmp.lt.s32.totalorder %s2178_s20, %s1788_s9 }
  0x30   : > { %p1785_p8 = pnand %p1783_p6, %p2186_p9  ;;  %p1791_p1 = scmp.lt.s32.totalorder %s1789_s17, %s1782_s13 }
  0x32   : > { %p1786_p10 = pneg %p1785_p8  ;;  %p1792_p12 = por %p1791_p1, %p1790_p3 }
  0x34   : > { %p1793_p13 = pnand %p1792_p12, %p1786_p10 }
  0x36   : > { %1796 = shalt.err (!%p1793_p13)
}
  0x37   : > { %s3155_s22 = smov 128   ;;  %s3157_s16 = smov 8  }
  0x38   : > { %1550 = dma.hbm_to_vmem [thread:$0]  (!%p2157_p7), %s2175_s18, 256, %s2178_s20, %s2180_s21, %s3155_s22, %s3155_s22, %s3157_s16  }
  0x39   : > { %s2214_s19 = sadd.s32 4294967295, %s2054_s29   ;;  %s3154_s13 = sadd.s32 4294967294, %s2054_s29  }
  0x3a   : > { %p89_p1 = scmp.ne.s32.totalorder %s2038_s25, %s2034_s24  ;;  %p3165_p3 = scmp.eq.s32.totalorder %s2214_s19, 0 }
  0x3b   : > { %p199_p11 = scmp.eq.s32.totalorder %s2214_s19, 1  ;;  %p205_p0 = scmp.eq.s32.totalorder %s3154_s13, 1 }
  0x3c   : > { %p1427_p2 = scmp.ge.s32.totalorder %s2054_s29, 1  ;;  %p2226_p4 = por %p3165_p3, %p89_p1 }
  0x3d   : > { %p3187_p5 = scmp.ne.s32.totalorder %s2042_s26, %s2038_s25  ;;  %p2237_p8 = por %p205_p0, %p89_p1 }
  0x3e   : > { %s3186_s8 = scalar_select %p2226_p4, 1, 0 }
  0x3f   : > { %p2233_p6 = por %p199_p11, %p3187_p5  ;;  %p268_p10 = scmp.lt.s32.totalorder %s2054_s29, 3 }
  0x40   : > { %s3189_s20 = scalar_select %p2237_p8, 1, 0 }
  0x41   : > { %s3188_s18 = scalar_select %p2233_p6, 1, 0 }
  0x42   : > { %3190 = sst [smem:[#allocation28_spill]] %s3189_s20  ;;  %p2242_p12 = pnand %p1427_p2, %p268_p10 }
  0x43   : > { %s1430_s17 = sshll.u32 %s2155_s10, 8  ;;  %s1515_s13 = sshll.u32 %s2050_s28, 12 }
  0x44   : > { %s3191_s9 = scalar_select %p2242_p12, 1, 0 }
  0x45   : > { %p1540_p13 = pneg %p2242_p12  ;;  %s3192_s1 = sld [smem:[#allocation29_spill]] }
  0x46   : > { %s294_s30 = scalar_lea.vmem [#allocation6], %s1430_s17  ;;  %s291_s28 = scalar_lea.sflag [#allocation3], %s2155_s10 }
  0x47   : > { %s303_s12 = sshll.u32 %s294_s30, 4  ;;  %p2257_p1 = pnand %p1540_p13, %p3165_p3  ;;  %s2261_s12 = int_to_ptr.vmem [resolvable:$true] %s303_s12 }
  0x49   : > { %s3193_s26 = scalar_select %p2257_p1, 1, 0 }
  0x4b   : > { %s2253_s2 = scalar_lea.hbm %s3192_s1, %s1515_s13  ;;  %s1802_s13 = scalar_lea.hbm %s3192_s1, 8192 }
  0x4c   : > { %s1797_s29 = scalar_lea.hbm %s2253_s2, 4096  ;;  %p1803_p5 = scmp.lt.u32.totalorder %s2253_s2, %s3192_s1 }
  0x4d   : > { %p1798_p11 = scmp.ne.s32.totalorder %s2253_s2, %s1797_s29  ;;  %p1804_p10 = scmp.lt.u32.totalorder %s1802_s13, %s1797_s29 }
  0x4e   : > { %p1806_p3 = scmp.lt.u32.totalorder %s1797_s29, %s2253_s2 }
  0x4f   : > { %p1800_p0 = pnand %p1798_p11, %p2186_p9  ;;  %p1805_p13 = por %p1804_p10, %p1803_p5 }
  0x51   : > { %p1801_p2 = pneg %p1800_p0  ;;  %p1807_p8 = por %p1806_p3, %p1805_p13 }
  0x53   : > { %p1808_p6 = pnand %p1807_p8, %p1801_p2 }
  0x55   : > { %1811 = shalt.err (!%p1808_p6)
}
  0x56   : > { %s1812_s30 = scalar_lea.vmem %s2261_s12, 4096  ;;  %s2059_s22 = smov [#allocation6]  }
  0x57   : > { %p1813_p11 = scmp.ne.s32.totalorder %s2261_s12, %s1812_s30  ;;  %s1817_s16 = sshll.u32 %s2059_s22, 4  ;;  %s1818_s16 = int_to_ptr.vmem [resolvable:$false] %s1817_s16 }
  0x58   : > { %s1819_s20 = scalar_lea.vmem %s1818_s16, 8192  ;;  %p1820_p12 = scmp.lt.s32.totalorder %s2261_s12, %s1818_s16 }
  0x59   : > { %p1815_p0 = pnand %p1813_p11, %p2186_p9  ;;  %p1821_p1 = scmp.lt.s32.totalorder %s1819_s20, %s1812_s30 }
  0x5b   : > { %p1816_p4 = pneg %p1815_p0  ;;  %p1822_p5 = por %p1821_p1, %p1820_p12 }
  0x5d   : > { %p1823_p10 = pnand %p1822_p5, %p1816_p4 }
  0x5f   : > { %1826 = shalt.err (!%p1823_p10)
}
  0x60   : > { %s3194_s29 = smov 8   ;;  %s3195_s13 = smov 128  }
  0x61   : > { %1547 = dma.hbm_to_vmem [thread:$0]  (!%p2157_p7), %s2253_s2, 4096, %s2261_s12, %s291_s28, %s3195_s13, %s3195_s13, %s3194_s29  }
  0x62   : > { %s1827_s1 = scalar_lea.hbm %s3145_s0, 16  ;;  %p3196_p4 = scmp.ne.s32.totalorder %s3193_s26, 0 }
  0x63   : > { %p1828_p3 = scmp.ne.s32.totalorder %s3145_s0, %s1827_s1  ;;  %p1834_p1 = scmp.lt.u32.totalorder %s1827_s1, %s3145_s0 }
  0x64   : > { %p1829_p6 = pneg %p3196_p4 }
  0x66   : > { %p1830_p8 = pnand %p1829_p6, %p1828_p3 }
  0x68   : > { %p1831_p12 = pneg %p1830_p8 }
  0x6a   : > { %p1836_p2 = pnand %p1834_p1, %p1831_p12 }
  0x6c   : > { %1839 = shalt.err (!%p1836_p2)
}
  0x6d   : > { %s2060_s7 = smov [#allocation2]   ;;  %s2310_s22 = scalar_lea.hbm %s3148_s3, %s2169_s15 }
  0x6e   : > { %1543 = dma.hbm_to_smem (!%p3196_p4), %s3145_s0, 16, %s2060_s7, [#allocation5]  }
  0x6f   : > { %s340_s1 = scalar_lea.vmem [#allocation9], %s2166_s14  ;;  %s1840_s26 = scalar_lea.hbm %s2310_s22, 256 }
  0x70   : > { %s349_s24 = sshll.u32 %s340_s1, 4  ;;  %p1841_p13 = scmp.ne.s32.totalorder %s2310_s22, %s1840_s26  ;;  %s2313_s24 = int_to_ptr.vmem [resolvable:$true] %s349_s24 }
  0x71   : > { %s1845_s30 = scalar_lea.hbm %s3148_s3, 512  ;;  %p1846_p5 = scmp.lt.u32.totalorder %s2310_s22, %s3148_s3 }
  0x72   : > { %p1843_p11 = pnand %p1841_p13, %p2186_p9  ;;  %p1847_p10 = scmp.lt.u32.totalorder %s1845_s30, %s1840_s26 }
  0x73   : > { %p1849_p4 = scmp.lt.u32.totalorder %s1840_s26, %s2310_s22 }
  0x74   : > { %p1844_p0 = pneg %p1843_p11  ;;  %p1848_p3 = por %p1847_p10, %p1846_p5 }
  0x76   : > { %p1850_p6 = por %p1849_p4, %p1848_p3 }
  0x78   : > { %p1851_p8 = pnand %p1850_p6, %p1844_p0 }
  0x7a   : > { %1854 = shalt.err (!%p1851_p8)
}
  0x7b   : > { %s1855_s28 = scalar_lea.vmem %s2313_s24, 256  ;;  %s2061_s12 = smov [#allocation9]  }
  0x7c   : > { %p1856_p12 = scmp.ne.s32.totalorder %s2313_s24, %s1855_s28  ;;  %s1860_s17 = sshll.u32 %s2061_s12, 4  ;;  %s1861_s17 = int_to_ptr.vmem [resolvable:$false] %s1860_s17 }
  0x7d   : > { %s1862_s1 = scalar_lea.vmem %s1861_s17, 512  ;;  %p1863_p13 = scmp.lt.s32.totalorder %s2313_s24, %s1861_s17 }
  0x7e   : > { %p1858_p1 = pnand %p1856_p12, %p2186_p9  ;;  %p1864_p11 = scmp.lt.s32.totalorder %s1862_s1, %s1855_s28 }
  0x80   : > { %p1859_p2 = pneg %p1858_p1  ;;  %p1865_p5 = por %p1864_p11, %p1863_p13 }
  0x82   : > { %p1866_p10 = pnand %p1865_p5, %p1859_p2 }
  0x84   : > { %1869 = shalt.err (!%p1866_p10)
}
  0x85   : > { %1553 = dma.hbm_to_vmem [thread:$0]  (!%p2157_p7), %s2310_s22, 256, %s2313_s24, %s2180_s21, %s3195_s13, %s3195_s13, %s3194_s29  }
  0x86   : > { %s2344_s7 = scalar_lea.hbm %s3149_s4, %s2169_s15  ;;  %s363_s30 = scalar_lea.vmem [#allocation10], %s2166_s14 }
  0x87   : > { %s372_s20 = sshll.u32 %s363_s30, 4  ;;  %s360_s2 = scalar_lea.sflag [#allocation11], %s2155_s10  ;;  %s2347_s20 = int_to_ptr.vmem [resolvable:$true] %s372_s20 }
  0x88   : > { %s1870_s28 = scalar_lea.hbm %s2344_s7, 256  ;;  %s1875_s24 = scalar_lea.hbm %s3149_s4, 512 }
  0x89   : > { %p1871_p0 = scmp.ne.s32.totalorder %s2344_s7, %s1870_s28  ;;  %p1876_p6 = scmp.lt.u32.totalorder %s2344_s7, %s3149_s4 }
  0x8a   : > { %p1877_p8 = scmp.lt.u32.totalorder %s1875_s24, %s1870_s28  ;;  %p1879_p1 = scmp.lt.u32.totalorder %s1870_s28, %s2344_s7 }
  0x8b   : > { %p1873_p3 = pnand %p1871_p0, %p2186_p9 }
  0x8c   : > { %p1878_p12 = por %p1877_p8, %p1876_p6 }
  0x8d   : > { %p1874_p4 = pneg %p1873_p3 }
  0x8e   : > { %p1880_p2 = por %p1879_p1, %p1878_p12 }
  0x90   : > { %p1881_p13 = pnand %p1880_p2, %p1874_p4 }
  0x92   : > { %1884 = shalt.err (!%p1881_p13)
}
  0x93   : > { %s1885_s14 = scalar_lea.vmem %s2347_s20, 256  ;;  %s2062_s17 = smov [#allocation10]  }
  0x94   : > { %p1886_p11 = scmp.ne.s32.totalorder %s2347_s20, %s1885_s14  ;;  %s1890_s1 = sshll.u32 %s2062_s17, 4  ;;  %s1891_s1 = int_to_ptr.vmem [resolvable:$false] %s1890_s1 }
  0x95   : > { %s1892_s26 = scalar_lea.vmem %s1891_s1, 512  ;;  %p1893_p0 = scmp.lt.s32.totalorder %s2347_s20, %s1891_s1 }
  0x96   : > { %p1888_p5 = pnand %p1886_p11, %p2186_p9  ;;  %p1894_p3 = scmp.lt.s32.totalorder %s1892_s26, %s1885_s14 }
  0x98   : > { %p1889_p10 = pneg %p1888_p5  ;;  %p1895_p6 = por %p1894_p3, %p1893_p0 }
  0x9a   : > { %p1896_p8 = pnand %p1895_p6, %p1889_p10 }
  0x9c   : > { %1899 = shalt.err (!%p1896_p8)
}
  0x9d   : > { %1556 = dma.hbm_to_vmem [thread:$0]  (!%p2157_p7), %s2344_s7, 256, %s2347_s20, %s360_s2, %s3195_s13, %s3195_s13, %s3194_s29  }
  0x9e   : > { %p3197_p9 = scmp.ne.s32.totalorder %s3191_s9, 0 }
  0x9f   : > { %p3198_p4 = scmp.eq.s32.totalorder (!%p3197_p9), %s2214_s19, 0 }
  0xa0   : > { %384 = sbr.rel (%p3197_p9) target bundleno = 358 (0x166), region = 40 }
  0xa7   : > { %2009 = dma.done.wait (%p3198_p4), [#allocation5], 16   ;;  %p3199_p12 = pmov %p3198_p4 }
  0xa8   : > { %s2383_s11 = sand.u32 1, %s2038_s25   ;;  %p3200_p7 = scmp.ne.s32.totalorder %s3186_s8, 0 }
  0xa9   : > { %2011 = vsyncadd (%p3199_p12), [#allocation5], 4294967280  ;;  %s1444_s23 = sshll.u32 %s2383_s11, 8  ;;  %s391_s10 = scalar_lea.sflag [#allocation3], %s2383_s11 }
  0xaa   : > { %s2387_s16 = scalar_lea.vmem [#allocation6], %s1444_s23 }
  0xab   : > { %2013 = dma.done.wait (%p3200_p7), %s391_s10, 4096  }
  0xac   : > { %2015 = vsyncadd (%p3200_p7), %s391_s10, 4294963200  ;;  %s399_s9 = sand.u32 1, %s2214_s19   ;;  %s2395_s29 = sshll.u32 %s2383_s11, 4 }
  0xad   : > { %s400_s13 = scalar_lea.sflag [#allocation8], %s399_s9  ;;  %s403_s7 = scalar_lea.vmem [#allocation7], %s2395_s29 }
  0xae   : > { %2017 = dma.done.wait (%p3200_p7), %s400_s13, 512  }
  0xaf   : > { %2019 = vsyncadd (%p3200_p7), %s400_s13, 4294966784  ;;  %s412_s30 = scalar_lea.vmem [#allocation9], %s2395_s29  ;;  %s418_s20 = scalar_lea.sflag [#allocation11], %s2383_s11 }
  0xb0   : > { %s2407_s2 = scalar_lea.vmem [#allocation10], %s2395_s29 }
  0xb1   : > { %2021 = dma.done.wait (%p3200_p7), %s418_s20, 256  }
  0xb2   : > { %2023 = vsyncadd (%p3200_p7), %s418_s20, 4294967040 }
  0xb3   : > { %426 = sfence }
  0xb4   : > { %v2414_v0 = vld [vmem:[%s2407_s2] sm:$0xff]  ;;  %v2063_v6 = vmov 0   ;;  %s2454_s8 = sld [smem:[#allocation2 + $0x1]]  ;;  %s2465_s28 = sld [smem:[#allocation2 + $0x2]] }
  0xb5   : > { %v564_v1 = vld [vmem:[%s2387_s16] sm:$0xff]  ;;  %v1456_v2 = vld [vmem:[%s2387_s16 + $0x10] sm:$0xff]  ;;  %vm566_vm0 = vcmp.eq.s32.totalorder %v2414_v0, 0  ;;  %vm598_vm2 = vcmp.eq.s32.totalorder %v2414_v0, 1  ;;  %vm632_vm3 = vcmp.eq.s32.totalorder %v2414_v0, 2  ;;  %vm666_vm5 = vcmp.eq.s32.totalorder %v2414_v0, 3 }
  0xb6   : > { %vm578_vm1 = vcmp.gt.f32.partialorder %v1456_v2, %v564_v1  ;;  %v580_v3 = vmax.f32 %v564_v1, %v1456_v2  ;;  %v1459_v4 = vld [vmem:[%s2387_s16 + $0x20] sm:$0xff]  ;;  %v568_v5 = vsel %vm566_vm0, %v564_v1, 0.0  ;;  %v1462_v13 = vld [vmem:[%s2387_s16 + $0x30] sm:$0xff]  ;;  %vm700_vm7 = vcmp.eq.s32.totalorder %v2414_v0, 4  ;;  %s2496_s21 = sld [smem:[#allocation2 + $0x3]]  ;;  %s2521_s22 = sld [smem:[#allocation2 + $0x4]] }
  0xb7   : > { %v582_v7 = vsel %vm578_vm1, 1, %v2063_v6  ;;  %v600_v10 = vsel %vm598_vm2, %v1456_v2, %v568_v5  ;;  %v1465_v25 = vld [vmem:[%s2387_s16 + $0x40] sm:$0xff]  ;;  %v1468_v31 = vld [vmem:[%s2387_s16 + $0x50] sm:$0xff]  ;;  %vm734_vm9 = vcmp.eq.s32.totalorder %v2414_v0, 5  ;;  %vm768_vm11 = vcmp.eq.s32.totalorder %v2414_v0, 6  ;;  %s2578_s24 = scalar_lea.vmem [#allocation13], %s2395_s29 }
  0xb8   : > { %v584_v8 = vsub.f32 %v564_v1, %v580_v3  ;;  %v590_v9 = vsub.f32 %v1456_v2, %v580_v3  ;;  %vm610_vm4 = vcmp.gt.f32.partialorder %v1459_v4, %v580_v3  ;;  %v612_v11 = vmax.f32 %v580_v3, %v1459_v4  ;;  %v1471_v35 = vld [vmem:[%s2387_s16 + $0x60] sm:$0xff]  ;;  %v1474_v45 = vld [vmem:[%s2387_s16 + $0x70] sm:$0xff]  ;;  %s2616_s15 = sld [smem:[#allocation2 + $0x5]]  ;;  %s2659_s12 = sld [smem:[#allocation2 + $0x6]] }
  0xb9   : > { %v634_v12 = vsel %vm632_vm3, %v1459_v4, %v600_v10  ;;  %v614_v19 = vsel %vm610_vm4, 2, %v582_v7  ;;  %vm802_vm14 = vcmp.eq.s32.totalorder %v2414_v0, 7  ;;  %v1477_v63 = vld [vmem:[%s2387_s16 + $0x80] sm:$0xff]  ;;  %v2451_v5 = vld [vmem:[%s2387_s16 + $0x90] sm:$0xff]  ;;  %vm836_vm1 = vcmp.eq.s32.totalorder %v2414_v0, 8  ;;  %s2679_s14 = sld [smem:[#allocation2 + $0x7]] }
  0xba   : > { %v586_v14 = vmul.f32 1.442695, %v584_v8  ;;  %v592_v15 = vmul.f32 1.442695, %v590_v9  ;;  %v668_v16 = vsel %vm666_vm5, %v1462_v13, %v634_v12  ;;  %v616_v17 = vsub.f32 %v580_v3, %v612_v11  ;;  %s1151_s17 = sshll.u32 %s2578_s24, 4  ;;  %s1519_s1 = sshll.u32 %s2046_s27, 8  ;;  %s2747_s17 = int_to_ptr.vmem [resolvable:$true] %s1151_s17 }
  0xbb   : > { %v624_v18 = vsub.f32 %v1459_v4, %v612_v11  ;;  %vm644_vm6 = vcmp.gt.f32.partialorder %v1462_v13, %v612_v11  ;;  %v646_v20 = vmax.f32 %v612_v11, %v1462_v13  ;;  %v702_v30 = vsel %vm700_vm7, %v1465_v25, %v668_v16  ;;  %s2779_s10 = scalar_lea.hbm %s3151_s6, %s1519_s1  ;;  %s2796_s13 = scalar_lea.sflag [#allocation14], %s399_s9 }
  0xbc   : > { %1626 = vpow2.f32 %v586_v14  ;;  %v618_v21 = vmul.f32 1.442695, %v616_v17  ;;  %v648_v26 = vsel %vm644_vm6, 3, %v614_v19  ;;  %v736_v37 = vsel %vm734_vm9, %v1468_v31, %v702_v30  ;;  %v2463_v17 = vld [vmem:[%s2387_s16 + $0xa0] sm:$0xff]  ;;  %p3201_p2 = scmp.ne.s32.totalorder %s3188_s18, 0  ;;  %s2064_s20 = smov [#allocation13]  }
  0xbd   : > { %1628 = vpow2.f32 %v592_v15  ;;  %v626_v22 = vmul.f32 1.442695, %v624_v18  ;;  %v650_v23 = vsub.f32 %v612_v11, %v646_v20  ;;  %v658_v24 = vsub.f32 %v1462_v13, %v646_v20 }
  0xbe   : > { %1630 = vpow2.f32 %v618_v21  ;;  %vm678_vm8 = vcmp.gt.f32.partialorder %v1465_v25, %v646_v20  ;;  %v680_v29 = vmax.f32 %v646_v20, %v1465_v25  ;;  %v770_v47 = vsel %vm768_vm11, %v1471_v35, %v736_v37 }
  0xbf   : > { %1632 = vpow2.f32 %v626_v22  ;;  %v652_v27 = vmul.f32 1.442695, %v650_v23  ;;  %v660_v28 = vmul.f32 1.442695, %v658_v24  ;;  %v682_v32 = vsel %vm678_vm8, 4, %v648_v26  ;;  %v2478_v26 = vld [vmem:[%s2387_s16 + $0xb0] sm:$0xff] }
  0xc0   : > { %v684_v33 = vsub.f32 %v646_v20, %v680_v29  ;;  %v692_v34 = vsub.f32 %v1465_v25, %v680_v29  ;;  %vm712_vm10 = vcmp.gt.f32.partialorder %v1468_v31, %v680_v29  ;;  %v714_v36 = vmax.f32 %v680_v29, %v1468_v31 }
  0xc1   : > { %1634 = vpow2.f32 %v652_v27  ;;  %v716_v40 = vsel %vm712_vm10, 5, %v682_v32  ;;  %v804_v62 = vsel %vm802_vm14, %v1474_v45, %v770_v47  ;;  %vm870_vm6 = vcmp.eq.s32.totalorder %v2414_v0, 9  ;;  %v2513_v47 = vld [vmem:[%s2387_s16 + $0xd0] sm:$0xff] }
  0xc2   : > { %1636 = vpow2.f32 %v660_v28  ;;  %v686_v38 = vmul.f32 1.442695, %v684_v33  ;;  %v694_v39 = vmul.f32 1.442695, %v692_v34  ;;  %v718_v42 = vsub.f32 %v680_v29, %v714_v36 }
  0xc3   : > { %v726_v43 = vsub.f32 %v1468_v31, %v714_v36  ;;  %vm746_vm12 = vcmp.gt.f32.partialorder %v1471_v35, %v714_v36  ;;  %v748_v44 = vmax.f32 %v714_v36, %v1471_v35  ;;  %v838_v13 = vsel %vm836_vm1, %v1477_v63, %v804_v62 }
  0xc4   : > { %1638 = vpow2.f32 %v686_v38  ;;  %v720_v49 = vmul.f32 1.442695, %v718_v42  ;;  %v750_v52 = vsel %vm746_vm12, 6, %v716_v40  ;;  %v872_v22 = vsel %vm870_vm6, %v2451_v5, %v838_v13  ;;  %v2494_v38 = vld [vmem:[%s2387_s16 + $0xc0] sm:$0xff] }
  0xc5   : > { %1640 = vpow2.f32 %v694_v39  ;;  %v728_v50 = vmul.f32 1.442695, %v726_v43  ;;  %v752_v53 = vsub.f32 %v714_v36, %v748_v44  ;;  %v760_v54 = vsub.f32 %v1471_v35, %v748_v44 }
  0xc6   : > { %v1627_v41 = vpop.eup %1626  ;;  %v782_v55 = vmax.f32 %v748_v44, %v1474_v45  ;;  %1642 = vpow2.f32 %v720_v49  ;;  %vm780_vm13 = vcmp.gt.f32.partialorder %v1474_v45, %v748_v44  ;;  %vm904_vm10 = vcmp.eq.s32.totalorder %v2414_v0, 10 }
  0xc7   : > { %v1629_v46 = vpop.eup %1628  ;;  %1644 = vpow2.f32 %v728_v50  ;;  %v754_v58 = vmul.f32 1.442695, %v752_v53  ;;  %v762_v2 = vmul.f32 1.442695, %v760_v54  ;;  %v784_v3 = vsel %vm780_vm13, 7, %v750_v52 }
  0xc8   : > { %v596_v48 = vadd.f32 %v1629_v46, %v1627_v41  ;;  %v1631_v51 = vpop.eup %1630  ;;  %v786_v61 = vsub.f32 %v748_v44, %v782_v55  ;;  %vm814_vm15 = vcmp.gt.f32.partialorder %v1477_v63, %v782_v55  ;;  %v816_v7 = vmax.f32 %v782_v55, %v1477_v63 }
  0xc9   : > { %v1633_v56 = vpop.eup %1632  ;;  %1646 = vpow2.f32 %v754_v58  ;;  %v794_v10 = vsub.f32 %v1474_v45, %v782_v55  ;;  %v818_v11 = vsel %vm814_vm15, 8, %v784_v3  ;;  %v906_v31 = vsel %vm904_vm10, %v2463_v17, %v872_v22 }
  0xca   : > { %v622_v57 = vmul.f32 %v1631_v51, %v596_v48  ;;  %v788_v9 = vmul.f32 1.442695, %v786_v61  ;;  %1648 = vpow2.f32 %v762_v2  ;;  %vm848_vm4 = vcmp.gt.f32.partialorder %v2451_v5, %v816_v7 }
  0xcb   : > { %v1635_v59 = vpop.eup %1634  ;;  %v2460_v14 = vmax.f32 %v816_v7, %v2451_v5  ;;  %v852_v18 = vsel %vm848_vm4, 9, %v818_v11  ;;  %v796_v21 = vmul.f32 1.442695, %v794_v10  ;;  %v820_v24 = vsub.f32 %v782_v55, %v816_v7  ;;  %v2563_v10 = vld [vmem:[%s2387_s16 + $0xf0] sm:$0xff] }
  0xcc   : > { %v630_v60 = vadd.f32 %v1633_v56, %v622_v57  ;;  %v1637_v1 = vpop.eup %1636  ;;  %1650 = vpow2.f32 %v788_v9  ;;  %v828_v30 = vsub.f32 %v1477_v63, %v816_v7  ;;  %v571_v32 = vstv %s2454_s8  ;;  %v2535_v56 = vld [vmem:[%s2387_s16 + $0xe0] sm:$0xff]  ;;  %s1904_s8 = sshll.u32 %s2064_s20, 4  ;;  %s1905_s8 = int_to_ptr.vmem [resolvable:$false] %s1904_s8 }
  0xcd   : > { %vm882_vm8 = vcmp.gt.f32.partialorder %v2463_v17, %v2460_v14  ;;  %v2475_v25 = vmax.f32 %v2460_v14, %v2463_v17  ;;  %1652 = vpow2.f32 %v796_v21  ;;  %v822_v35 = vmul.f32 1.442695, %v820_v24  ;;  %p1907_p5 = scmp.lt.s32.totalorder %s2747_s17, %s1905_s8 }
  0xce   : > { %v656_v4 = vmul.f32 %v1635_v59, %v630_v60  ;;  %v1639_v12 = vpop.eup %1638  ;;  %v886_v28 = vsel %vm882_vm8, 10, %v852_v18  ;;  %v854_v36 = vsub.f32 %v816_v7, %v2460_v14  ;;  %vm938_vm13 = vcmp.eq.s32.totalorder %v2414_v0, 11 }
  0xcf   : > { %v1641_v15 = vpop.eup %1640  ;;  %vm916_vm12 = vcmp.gt.f32.partialorder %v2478_v26, %v2475_v25  ;;  %v2489_v34 = vmax.f32 %v2475_v25, %v2478_v26  ;;  %v862_v40 = vsub.f32 %v2451_v5, %v2460_v14  ;;  %v940_v41 = vsel %vm938_vm13, %v2478_v26, %v906_v31 }
  0xd0   : > { %v664_v8 = vadd.f32 %v1637_v1, %v656_v4  ;;  %v1643_v19 = vpop.eup %1642  ;;  %v920_v37 = vsel %vm916_vm12, 11, %v886_v28  ;;  %v572_v43 = vsel %vm566_vm0, %v571_v32, 0.0  ;;  %v603_v44 = vstv %s2465_s28  ;;  %v2553_v1 = vld [vmem:[%s2407_s2 + $0x8] sm:$0xff]  ;;  %s1906_s28 = scalar_lea.vmem %s1905_s8, 512 }
  0xd1   : > { %v1645_v23 = vpop.eup %1644  ;;  %vm950_vm15 = vcmp.gt.f32.partialorder %v2494_v38, %v2489_v34  ;;  %v830_v45 = vmul.f32 1.442695, %v828_v30  ;;  %v888_v46 = vsub.f32 %v2460_v14, %v2475_v25  ;;  %v2517_v48 = vmax.f32 %v2489_v34, %v2494_v38 }
  0xd2   : > { %v690_v16 = vmul.f32 %v1639_v12, %v664_v8  ;;  %v954_v49 = vsel %vm950_vm15, 12, %v920_v37  ;;  %vm3173_vm4 = vcmp.eq.s32.totalorder %v2414_v0, 12  ;;  %vm3172_vm8 = vcmp.eq.s32.totalorder %v2414_v0, 13 }
  0xd3   : > { %v1647_v29 = vpop.eup %1646  ;;  %1654 = vpow2.f32 %v822_v35  ;;  %v856_v50 = vmul.f32 1.442695, %v854_v36  ;;  %v896_v51 = vsub.f32 %v2463_v17, %v2475_v25  ;;  %v974_v52 = vsel %vm3173_vm4, %v2494_v38, %v940_v41 }
  0xd4   : > { %v698_v20 = vadd.f32 %v1641_v15, %v690_v16  ;;  %v1649_v42 = vpop.eup %1648  ;;  %v864_v54 = vmul.f32 1.442695, %v862_v40  ;;  %vm984_vm0 = vcmp.gt.f32.partialorder %v2513_v47, %v2517_v48  ;;  %v2532_v55 = vmax.f32 %v2517_v48, %v2513_v47  ;;  %v565_v15 = vld [vmem:[%s2387_s16 + $0x8] sm:$0xff]  ;;  %v1457_v16 = vld [vmem:[%s2387_s16 + $0x18] sm:$0xff] }
  0xd5   : > { %v604_v58 = vsel %vm598_vm2, %v603_v44, %v572_v43  ;;  %v922_v59 = vsub.f32 %v2475_v25, %v2489_v34  ;;  %v988_v60 = vsel %vm984_vm0, 13, %v954_v49  ;;  %v2546_v61 = vsel %vm3172_vm8, %v2513_v47, %v974_v52 }
  0xd6   : > { %v724_v27 = vmul.f32 %v1643_v19, %v698_v20  ;;  %v1651_v57 = vpop.eup %1650  ;;  %1656 = vpow2.f32 %v830_v45  ;;  %v890_v62 = vmul.f32 1.442695, %v888_v46  ;;  %v930_v63 = vsub.f32 %v2478_v26, %v2489_v34 }
  0xd7   : > { %vm1018_vm12 = vcmp.gt.f32.partialorder %v2535_v56, %v2532_v55  ;;  %1658 = vpow2.f32 %v856_v50  ;;  %v898_v2 = vmul.f32 1.442695, %v896_v51  ;;  %v2557_v3 = vmax.f32 %v2532_v55, %v2535_v56  ;;  %v1653_v5 = vpop.eup %1652 }
  0xd8   : > { %v732_v33 = vadd.f32 %v1645_v23, %v724_v27  ;;  %v1022_v4 = vsel %vm1018_vm12, 14, %v988_v60  ;;  %v637_v7 = vstv %s2496_s21  ;;  %1660 = vpow2.f32 %v864_v54  ;;  %v1460_v27 = vld [vmem:[%s2387_s16 + $0x28] sm:$0xff] }
  0xd9   : > { %v956_v9 = vsub.f32 %v2489_v34, %v2517_v48  ;;  %v924_v11 = vmul.f32 1.442695, %v922_v59  ;;  %v964_v12 = vsub.f32 %v2494_v38, %v2517_v48  ;;  %vm1052_vm2 = vcmp.gt.f32.partialorder %v2563_v10, %v2557_v3 }
  0xda   : > { %v758_v39 = vmul.f32 %v1647_v29, %v732_v33  ;;  %vm567_vm15 = vcmp.eq.s32.totalorder %v2553_v1, 0  ;;  %1662 = vpow2.f32 %v890_v62  ;;  %v932_v13 = vmul.f32 1.442695, %v930_v63 }
  0xdb   : > { %v1056_v14 = vsel %vm1052_vm2, 15, %v1022_v4  ;;  %v638_v17 = vsel %vm632_vm3, %v637_v7, %v604_v58  ;;  %v671_v18 = vstv %s2521_s22  ;;  %1664 = vpow2.f32 %v898_v2 }
  0xdc   : > { %v766_v53 = vadd.f32 %v1649_v42, %v758_v39  ;;  %1096 = vst [vmem:[%s2578_s24] sm:$0xff] %v1056_v14  ;;  %v958_v20 = vmul.f32 1.442695, %v956_v9  ;;  %v569_v21 = vsel %vm567_vm15, %v565_v15, 0.0  ;;  %vm579_vm0 = vcmp.gt.f32.partialorder %v1457_v16, %v565_v15  ;;  %v1463_v42 = vld [vmem:[%s2387_s16 + $0x38] sm:$0xff] }
  0xdd   : > { %v1655_v22 = vpop.eup %1654  ;;  %1666 = vpow2.f32 %v924_v11  ;;  %v966_v23 = vmul.f32 1.442695, %v964_v12  ;;  %v581_v24 = vmax.f32 %v565_v15, %v1457_v16  ;;  %v2587_v25 = vsel %vm666_vm5, %v671_v18, %v638_v17 }
  0xde   : > { %v792_v8 = vmul.f32 %v1651_v57, %v766_v53  ;;  %1668 = vpow2.f32 %v932_v13  ;;  %v990_v26 = vsub.f32 %v2517_v48, %v2532_v55  ;;  %vm599_vm3 = vcmp.eq.s32.totalorder %v2553_v1, 1  ;;  %v1466_v57 = vld [vmem:[%s2387_s16 + $0x48] sm:$0xff] }
  0xdf   : > { %v583_v28 = vsel %vm579_vm0, 1, %v2063_v6  ;;  %v585_v29 = vsub.f32 %v565_v15, %v581_v24  ;;  %v591_v30 = vsub.f32 %v1457_v16, %v581_v24  ;;  %v601_v31 = vsel %vm599_vm3, %v1457_v16, %v569_v21  ;;  %v2632_v16 = vld [vmem:[%s2387_s16 + $0x68] sm:$0xff] }
  0xe0   : > { %v800_v19 = vadd.f32 %v1653_v5, %v792_v8  ;;  %v1657_v33 = vpop.eup %1656  ;;  %1670 = vpow2.f32 %v958_v20  ;;  %v998_v35 = vsub.f32 %v2513_v47, %v2532_v55  ;;  %vm611_vm5 = vcmp.gt.f32.partialorder %v1460_v27, %v581_v24  ;;  %v1469_v5 = vld [vmem:[%s2387_s16 + $0x58] sm:$0xff] }
  0xe1   : > { %v2598_v36 = vpop.eup %1658  ;;  %1672 = vpow2.f32 %v966_v23  ;;  %v588_v37 = vmul.f32 1.442695, %v585_v29  ;;  %v594_v38 = vmul.f32 1.442695, %v591_v30  ;;  %v613_v39 = vmax.f32 %v581_v24, %v1460_v27 }
  0xe2   : > { %v826_v34 = vmul.f32 %v1655_v22, %v800_v19  ;;  %v2600_v6 = vpop.eup %1660  ;;  %v992_v40 = vmul.f32 1.442695, %v990_v26  ;;  %v615_v41 = vsel %vm611_vm5, 2, %v583_v28  ;;  %vm633_vm12 = vcmp.eq.s32.totalorder %v2553_v1, 2 }
  0xe3   : > { %vm667_vm2 = vcmp.eq.s32.totalorder %v2553_v1, 3  ;;  %1674 = vpow2.f32 %v588_v37  ;;  %v617_v43 = vsub.f32 %v581_v24, %v613_v39  ;;  %v625_v45 = vsub.f32 %v1460_v27, %v613_v39 }
  0xe4   : > { %v635_v46 = vsel %vm633_vm12, %v1460_v27, %v601_v31  ;;  %v2607_v47 = vpop.eup %1662  ;;  %v1000_v48 = vmul.f32 1.442695, %v998_v35  ;;  %v1024_v49 = vsub.f32 %v2532_v55, %v2557_v3  ;;  %1676 = vpow2.f32 %v594_v38  ;;  %v2649_v35 = vld [vmem:[%s2387_s16 + $0x78] sm:$0xff] }
  0xe5   : > { %vm645_vm0 = vcmp.gt.f32.partialorder %v1463_v42, %v613_v39  ;;  %v2611_v50 = vpop.eup %1664  ;;  %v1032_v51 = vsub.f32 %v2535_v56, %v2557_v3  ;;  %v620_v52 = vmul.f32 1.442695, %v617_v43  ;;  %v628_v53 = vmul.f32 1.442695, %v625_v45 }
  0xe6   : > { %v647_v54 = vmax.f32 %v613_v39, %v1463_v42  ;;  %1678 = vpow2.f32 %v992_v40  ;;  %v649_v58 = vsel %vm645_vm0, 3, %v615_v41  ;;  %v669_v59 = vsel %vm667_vm2, %v1463_v42, %v635_v46 }
  0xe7   : > { %vm701_vm5 = vcmp.eq.s32.totalorder %v2553_v1, 4  ;;  %v2621_v55 = vpop.eup %1666  ;;  %1680 = vpow2.f32 %v620_v52  ;;  %v834_v2 = vadd.f32 %v1657_v33, %v826_v34  ;;  %vm735_vm0 = vcmp.eq.s32.totalorder %v2553_v1, 5 }
  0xe8   : > { %v651_v60 = vsub.f32 %v613_v39, %v647_v54  ;;  %v659_v62 = vsub.f32 %v1463_v42, %v647_v54  ;;  %vm679_vm8 = vcmp.gt.f32.partialorder %v1466_v57, %v647_v54  ;;  %v2623_v63 = vpop.eup %1668  ;;  %1682 = vpow2.f32 %v628_v53 }
  0xe9   : > { %v681_v4 = vmax.f32 %v647_v54, %v1466_v57  ;;  %v683_v11 = vsel %vm679_vm8, 4, %v649_v58  ;;  %v703_v12 = vsel %vm701_vm5, %v1466_v57, %v669_v59  ;;  %1684 = vpow2.f32 %v1000_v48  ;;  %v2657_v48 = vld [vmem:[%s2387_s16 + $0x88] sm:$0xff] }
  0xea   : > { %v654_v8 = vmul.f32 1.442695, %v651_v60  ;;  %v662_v9 = vmul.f32 1.442695, %v659_v62  ;;  %v2629_v13 = vpop.eup %1670  ;;  %v1026_v19 = vmul.f32 1.442695, %v1024_v49  ;;  %v2638_v21 = vsel %vm735_vm0, %v1469_v5, %v703_v12 }
  0xeb   : > { %v685_v14 = vsub.f32 %v647_v54, %v681_v4  ;;  %v693_v15 = vsub.f32 %v1466_v57, %v681_v4  ;;  %vm713_vm4 = vcmp.gt.f32.partialorder %v1469_v5, %v681_v4  ;;  %v2634_v17 = vpop.eup %1672  ;;  %v715_v20 = vmax.f32 %v681_v4, %v1469_v5 }
  0xec   : > { %1686 = vpow2.f32 %v654_v8  ;;  %v717_v24 = vsel %vm713_vm4, 5, %v683_v11  ;;  %v705_v31 = vstv %s2616_s15  ;;  %v860_v33 = vmul.f32 %v2598_v36, %v834_v2 }
  0xed   : > { %1688 = vpow2.f32 %v662_v9  ;;  %v688_v22 = vmul.f32 1.442695, %v685_v14  ;;  %v696_v23 = vmul.f32 1.442695, %v693_v15  ;;  %v1675_v26 = vpop.eup %1674  ;;  %v719_v27 = vsub.f32 %v681_v4, %v715_v20  ;;  %v2670_v15 = vld [vmem:[%s2387_s16 + $0x98] sm:$0xff] }
  0xee   : > { %v727_v28 = vsub.f32 %v1469_v5, %v715_v20  ;;  %vm747_vm8 = vcmp.gt.f32.partialorder %v2632_v16, %v715_v20  ;;  %v749_v29 = vmax.f32 %v715_v20, %v2632_v16  ;;  %v1677_v30 = vpop.eup %1676  ;;  %v2646_v34 = vmax.f32 %v2557_v3, %v2563_v10 }
  0xef   : > { %1690 = vpow2.f32 %v688_v22  ;;  %v597_v37 = vadd.f32 %v1677_v30, %v1675_v26  ;;  %v722_v38 = vmul.f32 1.442695, %v719_v27  ;;  %v751_v41 = vsel %vm747_vm8, 6, %v717_v24 }
  0xf0   : > { %1692 = vpow2.f32 %v696_v23  ;;  %v730_v39 = vmul.f32 1.442695, %v727_v28  ;;  %v2651_v40 = vpop.eup %1678  ;;  %v753_v42 = vsub.f32 %v715_v20, %v749_v29  ;;  %v761_v43 = vsub.f32 %v2632_v16, %v749_v29 }
  0xf1   : > { %1694 = vpow2.f32 %v1026_v19  ;;  %v1681_v36 = vpop.eup %1680  ;;  %v1034_v45 = vmul.f32 1.442695, %v1032_v51  ;;  %vm781_vm4 = vcmp.gt.f32.partialorder %v2649_v35, %v749_v29  ;;  %v783_v46 = vmax.f32 %v749_v29, %v2649_v35 }
  0xf2   : > { %1696 = vpow2.f32 %v722_v38  ;;  %v1683_v49 = vpop.eup %1682  ;;  %v1058_v52 = vsub.f32 %v2557_v3, %v2646_v34  ;;  %v623_v53 = vmul.f32 %v1681_v36, %v597_v37  ;;  %v756_v54 = vmul.f32 1.442695, %v753_v42 }
  0xf3   : > { %1698 = vpow2.f32 %v730_v39  ;;  %v764_v57 = vmul.f32 1.442695, %v761_v43  ;;  %v785_v58 = vsel %vm781_vm4, 7, %v751_v41  ;;  %v787_v51 = vsub.f32 %v749_v29, %v783_v46  ;;  %v2664_v60 = vpop.eup %1684  ;;  %v2684_v29 = vld [vmem:[%s2387_s16 + $0xa8] sm:$0xff] }
  0xf4   : > { %v795_v59 = vsub.f32 %v2649_v35, %v783_v46  ;;  %v868_v62 = vadd.f32 %v2600_v6, %v860_v33  ;;  %v631_v2 = vadd.f32 %v1683_v49, %v623_v53  ;;  %vm815_vm8 = vcmp.gt.f32.partialorder %v2657_v48, %v783_v46  ;;  %v2695_v49 = vld [vmem:[%s2387_s16 + $0xb8] sm:$0xff] }
  0xf5   : > { %v817_v4 = vmax.f32 %v783_v46, %v2657_v48  ;;  %1700 = vpow2.f32 %v756_v54  ;;  %v790_v5 = vmul.f32 1.442695, %v787_v51  ;;  %v819_v12 = vsel %vm815_vm8, 8, %v785_v58 }
  0xf6   : > { %v1687_v3 = vpop.eup %1686  ;;  %v798_v11 = vmul.f32 1.442695, %v795_v59  ;;  %v706_v6 = vsel %vm700_vm7, %v705_v31, %v2587_v25  ;;  %1702 = vpow2.f32 %v764_v57  ;;  %v894_v22 = vmul.f32 %v2607_v47, %v868_v62  ;;  %v2705_v59 = vld [vmem:[%s2387_s16 + $0xc8] sm:$0xff] }
  0xf7   : > { %v1689_v8 = vpop.eup %1688  ;;  %v657_v9 = vmul.f32 %v1687_v3, %v631_v2  ;;  %v821_v14 = vsub.f32 %v783_v46, %v817_v4  ;;  %v829_v19 = vsub.f32 %v2657_v48, %v817_v4  ;;  %vm849_vm4 = vcmp.gt.f32.partialorder %v2670_v15, %v817_v4 }
  0xf8   : > { %1704 = vpow2.f32 %v1034_v45  ;;  %v1060_v23 = vmul.f32 1.442695, %v1058_v52  ;;  %v851_v28 = vmax.f32 %v817_v4, %v2670_v15  ;;  %v853_v25 = vsel %vm849_vm4, 9, %v819_v12 }
  0xf9   : > { %v1691_v20 = vpop.eup %1690  ;;  %v665_v24 = vadd.f32 %v1689_v8, %v657_v9  ;;  %1706 = vpow2.f32 %v790_v5  ;;  %v824_v27 = vmul.f32 1.442695, %v821_v14  ;;  %v739_v33 = vstv %s2659_s12  ;;  %v2718_v14 = vld [vmem:[%s2387_s16 + $0xd8] sm:$0xff] }
  0xfa   : > { %v1693_v26 = vpop.eup %1692  ;;  %v1066_v37 = vsub.f32 %v2563_v10, %v2646_v34  ;;  %1708 = vpow2.f32 %v798_v11  ;;  %v832_v39 = vmul.f32 1.442695, %v829_v19  ;;  %v855_v41 = vsub.f32 %v817_v4, %v851_v28 }
  0xfb   : > { %v2686_v30 = vpop.eup %1694  ;;  %v691_v47 = vmul.f32 %v1691_v20, %v665_v24  ;;  %v863_v42 = vsub.f32 %v2670_v15, %v851_v28  ;;  %vm883_vm7 = vcmp.gt.f32.partialorder %v2684_v29, %v851_v28  ;;  %1710 = vpow2.f32 %v1060_v23 }
  0xfc   : > { %v1697_v38 = vpop.eup %1696  ;;  %v885_v45 = vmax.f32 %v851_v28, %v2684_v29  ;;  %v887_v46 = vsel %vm883_vm7, 10, %v853_v25  ;;  %v902_v52 = vadd.f32 %v2611_v50, %v894_v22  ;;  %v573_v53 = vsel %vm567_vm15, %v571_v32, 0.0 }
  0xfd   : > { %v1699_v43 = vpop.eup %1698  ;;  %v699_v36 = vadd.f32 %v1693_v26, %v691_v47  ;;  %1712 = vpow2.f32 %v824_v27  ;;  %v858_v54 = vmul.f32 1.442695, %v855_v41  ;;  %v866_v2 = vmul.f32 1.442695, %v863_v42 }
  0xfe   : > { %v889_v58 = vsub.f32 %v851_v28, %v885_v45  ;;  %v897_v51 = vsub.f32 %v2684_v29, %v885_v45  ;;  %vm917_vm8 = vcmp.gt.f32.partialorder %v2695_v49, %v885_v45  ;;  %1714 = vpow2.f32 %v832_v39  ;;  %v2736_v39 = vld [vmem:[%s2387_s16 + $0xe8] sm:$0xff] }
  0xff   : > { %v725_v57 = vmul.f32 %v1697_v38, %v699_v36  ;;  %v1701_v62 = vpop.eup %1700  ;;  %v919_v50 = vmax.f32 %v885_v45, %v2695_v49  ;;  %v921_v4 = vsel %vm917_vm8, 11, %v887_v46  ;;  %v2712_v32 = vsel %vm734_vm9, %v739_v33, %v706_v6 }
 0x100   : > { %v773_v3 = vstv %s2679_s14  ;;  %1716 = vpow2.f32 %v858_v54  ;;  %v1703_v8 = vpop.eup %1702  ;;  %v892_v9 = vmul.f32 1.442695, %v889_v58  ;;  %v605_v6 = vsel %vm599_vm3, %v603_v44, %v573_v53  ;;  %v2757_v53 = vld [vmem:[%s2387_s16 + $0xf8] sm:$0xff]  ;;  %s1450_s16 = sshll.u32 %s2383_s11, 5 }
 0x101   : > { %v733_v5 = vadd.f32 %v1699_v43, %v725_v57  ;;  %v923_v11 = vsub.f32 %v885_v45, %v919_v50  ;;  %vm951_vm15 = vcmp.gt.f32.partialorder %v2705_v59, %v919_v50  ;;  %v953_v12 = vmax.f32 %v919_v50, %v2705_v59 }
 0x102   : > { %v2720_v19 = vpop.eup %1704  ;;  %v900_v22 = vmul.f32 1.442695, %v897_v51  ;;  %v955_v23 = vsel %vm951_vm15, 12, %v921_v4  ;;  %v928_v26 = vmul.f32 %v2621_v55, %v902_v52  ;;  %v2727_v27 = vmul.f32 1.442695, %v1066_v37 }
 0x103   : > { %v759_v20 = vmul.f32 %v1701_v62, %v733_v5  ;;  %v1707_v24 = vpop.eup %1706  ;;  %1718 = vpow2.f32 %v866_v2  ;;  %v931_v28 = vsub.f32 %v2695_v49, %v919_v50  ;;  %v957_v38 = vsub.f32 %v919_v50, %v953_v12  ;;  %v2763_v62 = vld [vmem:[%s403_s7] sm:$0xff] }
 0x104   : > { %v1709_v25 = vpop.eup %1708  ;;  %vm985_vm9 = vcmp.gt.f32.partialorder %v2718_v14, %v953_v12  ;;  %v2733_v44 = vmax.f32 %v953_v12, %v2718_v14  ;;  %v639_v55 = vsel %vm633_vm12, %v637_v7, %v605_v6  ;;  %1720 = vpow2.f32 %v892_v9  ;;  %v2784_v9 = vld [vmem:[%s403_s7 + $0x8] sm:$0xff]  ;;  %s1900_s7 = scalar_lea.vmem %s2747_s17, 256 }
 0x105   : > { %v767_v47 = vadd.f32 %v1703_v8, %v759_v20  ;;  %v926_v37 = vmul.f32 1.442695, %v923_v11  ;;  %v989_v41 = vsel %vm985_vm9, 13, %v955_v23  ;;  %v2742_v42 = vpop.eup %1710  ;;  %vm769_vm3 = vcmp.eq.s32.totalorder %v2553_v1, 6  ;;  %p1901_p1 = scmp.ne.s32.totalorder %s2747_s17, %s1900_s7  ;;  %p1908_p10 = scmp.lt.s32.totalorder %s1906_s28, %s1900_s7 }
 0x106   : > { %1722 = vpow2.f32 %v900_v22  ;;  %v965_v36 = vsub.f32 %v2705_v59, %v953_v12  ;;  %v934_v7 = vmul.f32 1.442695, %v931_v28  ;;  %v991_v46 = vsub.f32 %v953_v12, %v2733_v44 }
 0x107   : > { %v793_v43 = vmul.f32 %v1707_v24, %v767_v47  ;;  %v1713_v45 = vpop.eup %1712  ;;  %vm1019_vm12 = vcmp.gt.f32.partialorder %v2736_v39, %v2733_v44  ;;  %v2754_v52 = vmax.f32 %v2733_v44, %v2736_v39  ;;  %v960_v57 = vmul.f32 1.442695, %v957_v38  ;;  %p1902_p13 = pnand %p1901_p1, %p3201_p2  ;;  %p1909_p0 = por %p1908_p10, %p1907_p5 }
 0x108   : > { %v999_v58 = vsub.f32 %v2718_v14, %v2733_v44  ;;  %v1023_v51 = vsel %vm1019_vm12, 14, %v989_v41  ;;  %v1715_v2 = vpop.eup %1714  ;;  %v936_v50 = vadd.f32 %v2623_v63, %v928_v26  ;;  %v2770_v4 = vsel %vm667_vm2, %v671_v18, %v639_v55 }
 0x109   : > { %v801_v54 = vadd.f32 %v1709_v25, %v793_v43  ;;  %1724 = vpow2.f32 %v926_v37  ;;  %vm1053_vm4 = vcmp.gt.f32.partialorder %v2757_v53, %v2754_v52  ;;  %vm803_vm7 = vcmp.eq.s32.totalorder %v2553_v1, 7  ;;  %p1903_p11 = pneg %p1902_p13 }
 0x10a   : > { %v1717_v5 = vpop.eup %1716  ;;  %v968_v8 = vmul.f32 1.442695, %v965_v36  ;;  %v1057_v18 = vsel %vm1053_vm4, 15, %v1023_v51  ;;  %v771_v11 = vsel %vm769_vm3, %v2632_v16, %v2638_v21  ;;  %1726 = vpow2.f32 %v934_v7 }
 0x10b   : > { %v827_v63 = vmul.f32 %v1713_v45, %v801_v54  ;;  %v994_v12 = vmul.f32 1.442695, %v991_v46  ;;  %1097 = vst [vmem:[%s2578_s24 + $0x8] sm:$0xff] %v1057_v18  ;;  %v504_v6 = vand.u32 2147483647, %v2763_v62  ;;  %1728 = vpow2.f32 %v960_v57  ;;  %p1910_p3 = pnand %p1909_p0, %p1903_p11 }
 0x10c   : > { %v1002_v22 = vmul.f32 1.442695, %v999_v58  ;;  %v1453_v23 = vmul.f32 -1.442695, %v2763_v62 }
 0x10d   : > { %v835_v20 = vadd.f32 %v1715_v2, %v827_v63 }
 0x10e   : > { %1913 = shalt.err (!%p1910_p3)
}
 0x10f   : > { %s1914_s19 = scalar_lea.hbm %s2779_s10, 256  ;;  %s1918_s22 = scalar_lea.hbm %s3151_s6, 512 }
 0x110   : > { %p1915_p6 = scmp.ne.s32.totalorder %s2779_s10, %s1914_s19  ;;  %p1919_p4 = scmp.lt.u32.totalorder %s2779_s10, %s3151_s6 }
 0x111   : > { %p1920_p12 = scmp.lt.u32.totalorder %s1918_s22, %s1914_s19  ;;  %p1922_p1 = scmp.lt.u32.totalorder %s1914_s19, %s2779_s10 }
 0x112   : > { %p1916_p8 = pnand %p1915_p6, %p3201_p2 }
 0x113   : > { %p1921_p7 = por %p1920_p12, %p1919_p4 }
 0x114   : > { %p1917_p9 = pneg %p1916_p8 }
 0x115   : > { %p1923_p13 = por %p1922_p1, %p1921_p7 }
 0x117   : > { %p1924_p11 = pnand %p1923_p13, %p1917_p9 }
 0x119   : > { %1927 = shalt.err (!%p1924_p11)
}
 0x11a   : > { %s2065_s23 = smov 128   ;;  %s2066_s7 = smov 8   ;;  %v1719_v16 = vpop.eup %1718  ;;  %v1025_v21 = vsub.f32 %v2733_v44, %v2754_v52  ;;  %v2827_v24 = vmax.f32 %v2754_v52, %v2757_v53  ;;  %v506_v26 = vsub.f32 0.0, %v504_v6  ;;  %v505_v28 = vand.u32 2147483647, %v2784_v9 }
 0x11b   : > { %1535 = dma.vmem_to_hbm [thread:$0]  (%p3201_p2), %s2747_s17, 256, %s2779_s10, %s2796_s13, %s2065_s23, %s2065_s23, %s2066_s7   ;;  %v962_v25 = vmul.f32 %v2629_v13, %v936_v50  ;;  %v805_v47 = vsel %vm803_vm7, %v2649_v35, %v771_v11  ;;  %v861_v38 = vmul.f32 %v1717_v5, %v835_v20  ;;  %1730 = vpow2.f32 %v968_v8  ;;  %v1721_v55 = vpop.eup %1720 }
 0x11c   : > { %s2834_s17 = sld [smem:[#allocation2 + $0x8]]  ;;  %v1033_v44 = vsub.f32 %v2736_v39, %v2754_v52  ;;  %v508_v37 = vmul.f32 1.442695, %v506_v26  ;;  %1732 = vpow2.f32 %v1453_v23  ;;  %v507_v41 = vsub.f32 0.0, %v505_v28  ;;  %v1723_v43 = vpop.eup %1722  ;;  %s2843_s10 = scalar_lea.vmem [#allocation15], %s1450_s16 }
 0x11d   : > { %v869_v36 = vadd.f32 %v1719_v16, %v861_v38  ;;  %1734 = vpow2.f32 %v994_v12  ;;  %v1454_v13 = vmul.f32 -1.442695, %v2784_v9  ;;  %v1028_v45 = vmul.f32 1.442695, %v1025_v21  ;;  %v1725_v57 = vpop.eup %1724  ;;  %s2848_s20 = sld [smem:[#allocation2 + $0x9]]  ;;  %s2875_s15 = sld [smem:[#allocation2 + $0xa]] }
 0x11e   : > { %1736 = vpow2.f32 %v1002_v22  ;;  %v1059_v35 = vsub.f32 %v2754_v52, %v2827_v24  ;;  %v510_v7 = vmul.f32 1.442695, %v507_v41  ;;  %v2067_v46 = vmov 0.0   ;;  %v1727_v5 = vpop.eup %1726  ;;  %s2890_s12 = sld [smem:[#allocation2 + $0xb]]  ;;  %s2904_s16 = sld [smem:[#allocation2 + $0xc]] }
 0x11f   : > { %1503 = vst [vmem:[%s2843_s10 + $0x18] sm:$0xff] %v2067_v46  ;;  %v895_v54 = vmul.f32 %v1721_v55, %v869_v36  ;;  %1738 = vpow2.f32 %v508_v37  ;;  %vm487_vm2 = vcmp.ne.s32.totalorder %v2414_v0, 255  ;;  %vm488_vm8 = vcmp.ne.s32.totalorder %v2553_v1, 255  ;;  %v1729_v11 = vpop.eup %1728  ;;  %s2914_s14 = sld [smem:[#allocation2]]  ;;  %s2921_s8 = sld [smem:[#allocation2 + $0xd]] }
 0x120   : > { %vm837_vm15 = vcmp.eq.s32.totalorder %v2553_v1, 8  ;;  %v1036_v52 = vmul.f32 1.442695, %v1033_v44  ;;  %v1067_v58 = vsub.f32 %v2757_v53, %v2827_v24  ;;  %1740 = vpow2.f32 %v510_v7  ;;  %s2945_s28 = sld [smem:[#allocation2 + $0xe]]  ;;  %s2965_s9 = sld [smem:[#allocation2 + $0xf]] }
 0x121   : > { %v970_v51 = vadd.f32 %v2634_v17, %v962_v25  ;;  %v707_v2 = vsel %vm701_vm5, %v705_v31, %v2770_v4  ;;  %v903_v50 = vadd.f32 %v1723_v43, %v895_v54  ;;  %1742 = vpow2.f32 %v1454_v13  ;;  %s2995_s24 = scalar_lea.hbm %s3150_s5, %s1519_s1  ;;  %s1108_s1 = scalar_lea.sflag [#allocation4], %s2383_s11 }
 0x122   : > { %1744 = vpow2.f32 %v1028_v45  ;;  %v1062_v63 = vmul.f32 1.442695, %v1059_v35  ;;  %v2859_v8 = vsel %vm487_vm2, 1.0, %v2067_v46  ;;  %v2861_v18 = vsel %vm488_vm8, 1.0, %v2067_v46  ;;  %v2926_v46 = vld [vmem:[%s412_s30] sm:$0xff] }
 0x123   : > { %v839_v17 = vsel %vm837_vm15, %v2657_v48, %v805_v47  ;;  %vm871_vm9 = vcmp.eq.s32.totalorder %v2553_v1, 9  ;;  %v929_v12 = vmul.f32 %v1725_v57, %v903_v50  ;;  %v562_v31 = vadd.f32 %v2861_v18, %v2859_v8 }
 0x124   : > { %v774_v4 = vsel %vm768_vm11, %v773_v3, %v2712_v32  ;;  %v807_v6 = vstv %s2834_s17  ;;  %1746 = vpow2.f32 %v1036_v52  ;;  %v1070_v20 = vmul.f32 1.442695, %v1067_v58  ;;  %s2068_s17 = smov [#allocation12]  }
 0x125   : > { %v1731_v22 = vpop.eup %1730  ;;  %1748 = vpow2.f32 %v2727_v27  ;;  %v741_v48 = vsel %vm735_vm0, %v739_v33, %v707_v2  ;;  %v937_v23 = vadd.f32 %v1727_v5, %v929_v12  ;;  %1501 = vst [vmem:[%s2843_s10 + $0x8] sm:$0xff] %v562_v31  ;;  %v996_v16 = vmul.f32 %v2651_v40, %v970_v51  ;;  %v2942_v12 = vld [vmem:[%s412_s30 + $0x8] sm:$0xff]  ;;  %s2955_s30 = scalar_lea.vmem [#allocation12], %s2395_s29  ;;  %s2983_s29 = sld [smem:[#allocation2 + $0x10]] }
 0x126   : > { %v1733_v21 = vpop.eup %1732  ;;  %v873_v32 = vsel %vm871_vm9, %v2670_v15, %v839_v17  ;;  %vm905_vm11 = vcmp.eq.s32.totalorder %v2553_v1, 10  ;;  %1750 = vpow2.f32 %v1062_v63  ;;  %v808_v27 = vsel %vm802_vm14, %v807_v6, %v774_v4  ;;  %s1133_s19 = sshll.u32 %s2955_s30, 4  ;;  %s2972_s19 = int_to_ptr.vmem [resolvable:$true] %s1133_s19 }
 0x127   : > { %v1735_v26 = vpop.eup %1734  ;;  %v963_v28 = vmul.f32 %v1729_v11, %v937_v23  ;;  %v550_v25 = vadd.f32 1.0, %v1733_v21  ;;  %v841_v47 = vstv %s2848_s20  ;;  %v775_v40 = vsel %vm769_vm3, %v773_v3, %v741_v48  ;;  %s1928_s26 = scalar_lea.vmem %s2972_s19, 256  ;;  %s1932_s20 = sshll.u32 %s2068_s17, 4  ;;  %s1933_s20 = int_to_ptr.vmem [resolvable:$false] %s1932_s20 }
 0x128   : > { %v1737_v33 = vpop.eup %1736  ;;  %1752 = vpow2.f32 %v1070_v20  ;;  %v1004_v15 = vadd.f32 %v2664_v60, %v996_v16  ;;  %v907_v55 = vsel %vm905_vm11, %v2684_v29, %v873_v32  ;;  %vm939_vm14 = vcmp.eq.s32.totalorder %v2553_v1, 11  ;;  %p1929_p5 = scmp.ne.s32.totalorder %s2972_s19, %s1928_s26  ;;  %p1935_p3 = scmp.lt.s32.totalorder %s2972_s19, %s1933_s20 }
 0x129   : > { %v2898_v38 = vpop.eup %1738  ;;  %v971_v44 = vadd.f32 %v1731_v22, %v963_v28  ;;  %1754 = vrcp.f32 %v550_v25  ;;  %v842_v43 = vsel %vm836_vm1, %v841_v47, %v808_v27  ;;  %v809_v29 = vsel %vm803_vm7, %v807_v6, %v775_v40 }
 0x12a   : > { %v2906_v37 = vpop.eup %1740  ;;  %v512_v3 = vadd.f32 1.0, %v2898_v38  ;;  %v1030_v60 = vmul.f32 %v2686_v30, %v1004_v15  ;;  %v941_v35 = vsel %vm939_vm14, %v2695_v49, %v907_v55  ;;  %v875_v30 = vstv %s2875_s15  ;;  %p1930_p10 = pnand %p1929_p5, %p3201_p2  ;;  %s1934_s15 = scalar_lea.vmem %s1933_s20, 512 }
 0x12b   : > { %v1743_v41 = vpop.eup %1742  ;;  %v521_v36 = vadd.f32 1.0, %v2906_v37  ;;  %v997_v13 = vmul.f32 %v1735_v26, %v971_v44  ;;  %vm973_vm1 = vcmp.eq.s32.totalorder %v2553_v1, 12  ;;  %v515_v54 = vmul.f32 -0.5, %v2898_v38  ;;  %p1936_p6 = scmp.lt.s32.totalorder %s1934_s15, %s1928_s26 }
 0x12c   : > { %v1745_v45 = vpop.eup %1744  ;;  %v551_v7 = vadd.f32 1.0, %v1743_v41  ;;  %1756 = vlog2.f32 %v512_v3  ;;  %v843_v49 = vsel %vm837_vm15, %v841_v47, %v809_v29  ;;  %v524_v58 = vmul.f32 -0.5, %v2906_v37  ;;  %p1931_p0 = pneg %p1930_p10 }
 0x12d   : > { %1758 = vlog2.f32 %v521_v36  ;;  %v1005_v57 = vadd.f32 %v1737_v33, %v997_v13  ;;  %v1038_v51 = vadd.f32 %v2720_v19, %v1030_v60  ;;  %v876_v50 = vsel %vm870_vm6, %v875_v30, %v842_v43  ;;  %p1937_p8 = por %p1936_p6, %p1935_p3 }
 0x12e   : > { %v1747_v52 = vpop.eup %1746  ;;  %1760 = vrcp.f32 %v551_v7  ;;  %v909_v5 = vstv %s2890_s12  ;;  %v975_v17 = vsel %vm973_vm1, %v2705_v59, %v941_v35  ;;  %vm1007_vm5 = vcmp.eq.s32.totalorder %v2553_v1, 13 }
 0x12f   : > { %v1749_v2 = vpop.eup %1748  ;;  %v1031_v63 = vmul.f32 %v1745_v45, %v1005_v57  ;;  %vm497_vm0 = vcmp.eq.f32.partialorder %v2926_v46, 0.0  ;;  %v1064_v19 = vmul.f32 %v2742_v42, %v1038_v51  ;;  %v516_v31 = vadd.f32 1.0, %v515_v54  ;;  %v3015_v51 = vld [vmem:[%s2407_s2] sm:$0xff]  ;;  %p1938_p9 = pnand %p1937_p8, %p1931_p0 }
 0x130   : > { %v1751_v11 = vpop.eup %1750  ;;  %v877_v4 = vsel %vm871_vm9, %v875_v30, %v843_v49  ;;  %v943_v6 = vstv %s2904_s16  ;;  %v518_v22 = vand.u32 2147483647, %v2898_v38  ;;  %v525_v48 = vadd.f32 1.0, %v524_v58 }
 0x131   : > { %v1039_v20 = vadd.f32 %v1747_v52, %v1031_v63  ;;  %v910_v23 = vsel %vm904_vm10, %v909_v5, %v876_v50  ;;  %v1072_v16 = vadd.f32 %v1749_v2, %v1064_v19  ;;  %vm498_vm6 = vcmp.eq.f32.partialorder %v2942_v12, 0.0 }
 0x132   : > { %v1753_v59 = vpop.eup %1752  ;;  %v499_v42 = vstv %s2914_s14  ;;  %v527_v32 = vand.u32 2147483647, %v2906_v37  ;;  %v502_v27 = vmax.f32 %v2763_v62, 0.0  ;;  %v503_v28 = vmax.f32 %v2784_v9, 0.0 }
 0x133   : > { %v1755_v21 = vpop.eup %1754  ;;  %v1065_v26 = vmul.f32 %v1751_v11, %v1039_v20  ;;  %v977_v25 = vstv %s2921_s8  ;;  %1762 = vlog2.f32 %v1072_v16  ;;  %v517_v33 = vmul.f32 %v2898_v38, %v516_v31 }
 0x134   : > { %556 = vst [vmem:[%s2955_s30] sm:$0xff] %v1755_v21  ;;  %v911_v47 = vsel %vm905_vm11, %v909_v5, %v877_v4  ;;  %v944_v40 = vsel %vm938_vm13, %v943_v6, %v910_v23  ;;  %v500_v44 = vsel %vm497_vm0, %v499_v42, 1.0  ;;  %v501_v3 = vsel %vm498_vm6, %v499_v42, 1.0 }
 0x135   : > { %v1073_v15 = vadd.f32 %v1753_v59, %v1065_v26  ;;  %vm2978_vm10 = vcmp.lt.f32.partialorder %v518_v22, 0.0004427343  ;;  %v526_v60 = vmul.f32 %v2906_v37, %v525_v48  ;;  %vm2985_vm13 = vcmp.lt.f32.partialorder %v527_v32, 0.0004427343 }
 0x136   : > { %v1757_v55 = vpop.eup %1756  ;;  %v538_v36 = vsub.f32 1.0, %v2926_v46  ;;  %v945_v45 = vsel %vm939_vm14, %v943_v6, %v911_v47  ;;  %vm3206_vm3 = vcmp.eq.s32.totalorder %v2414_v0, 12  ;;  %v1011_v7 = vstv %s2945_s28 }
 0x137   : > { %v1759_v41 = vpop.eup %1758  ;;  %v514_v43 = vmul.f32 0.6931472, %v1757_v55  ;;  %1764 = vlog2.f32 %v1073_v15  ;;  %v978_v35 = vsel %vm3206_vm3, %v977_v25, %v944_v40  ;;  %v1009_v30 = vsel %vm1007_vm5, %v2718_v14, %v975_v17 }
 0x138   : > { %v1761_v37 = vpop.eup %1760  ;;  %v523_v13 = vmul.f32 0.6931472, %v1759_v41  ;;  %v539_v57 = vsub.f32 1.0, %v2942_v12  ;;  %v534_v58 = vmul.f32 %v500_v44, %v2926_v46  ;;  %vm1040_vm12 = vcmp.eq.s32.totalorder %v3015_v51, 14 }
 0x139   : > { %557 = vst [vmem:[%s2955_s30 + $0x8] sm:$0xff] %v1761_v37  ;;  %v520_v54 = vsel %vm2978_vm10, %v517_v33, %v514_v43 }
 0x13a   : > { %v529_v52 = vsel %vm2985_vm13, %v526_v60, %v523_v13  ;;  %v530_v49 = vadd.f32 %v520_v54, %v502_v27 }
 0x13b   : > { %1941 = shalt.err (!%p1938_p9)
}
 0x13c   : > { %s1942_s2 = scalar_lea.hbm %s2995_s24, 256  ;;  %s1946_s14 = scalar_lea.hbm %s3150_s5, 512 }
 0x13d   : > { %p1943_p4 = scmp.ne.s32.totalorder %s2995_s24, %s1942_s2  ;;  %p1947_p1 = scmp.lt.u32.totalorder %s2995_s24, %s3150_s5 }
 0x13e   : > { %p1948_p13 = scmp.lt.u32.totalorder %s1946_s14, %s1942_s2  ;;  %p1950_p5 = scmp.lt.u32.totalorder %s1942_s2, %s2995_s24 }
 0x13f   : > { %p1944_p12 = pnand %p1943_p4, %p3201_p2 }
 0x140   : > { %p1949_p11 = por %p1948_p13, %p1947_p1 }
 0x141   : > { %p1945_p7 = pneg %p1944_p12 }
 0x142   : > { %p1951_p10 = por %p1950_p5, %p1949_p11 }
 0x144   : > { %p1952_p0 = pnand %p1951_p10, %p1945_p7 }
 0x146   : > { %1955 = shalt.err (!%p1952_p0)
}
 0x147   : > { %1534 = dma.vmem_to_hbm [thread:$0]  (%p3201_p2), %s2972_s19, 256, %s2995_s24, %s1108_s1, %s2065_s23, %s2065_s23, %s2066_s7   ;;  %v531_v14 = vadd.f32 %v529_v52, %v503_v28  ;;  %v535_v46 = vmul.f32 %v501_v3, %v2942_v12  ;;  %v979_v2 = vsel %vm973_vm1, %v977_v25, %v945_v45  ;;  %vm3207_vm4 = vcmp.eq.s32.totalorder %v2414_v0, 13  ;;  %v1763_v31 = vpop.eup %1762 }
 0x148   : > { %v1012_v50 = vsel %vm3207_vm4, %v1011_v7, %v978_v35  ;;  %v532_v5 = vsub.f32 %v530_v49, %v2763_v62  ;;  %v540_v63 = vmul.f32 %v538_v36, %v530_v49  ;;  %vm1041_vm7 = vcmp.eq.s32.totalorder %v2553_v1, 14  ;;  %s1169_s11 = sshll.u32 %s2843_s10, 4  ;;  %s1521_s8 = sshll.u32 %s2046_s27, 9  ;;  %s3087_s11 = int_to_ptr.vmem [resolvable:$true] %s1169_s11 }
 0x149   : > { %v1045_v11 = vstv %s2965_s9  ;;  %v533_v17 = vsub.f32 %v531_v14, %v2784_v9  ;;  %v541_v19 = vmul.f32 %v539_v57, %v531_v14  ;;  %v1042_v12 = vsel %vm1040_vm12, %v2535_v56, %v2546_v61  ;;  %v1765_v61 = vpop.eup %1764  ;;  %s1956_s24 = scalar_lea.vmem %s3087_s11, 512  ;;  %s2069_s1 = smov [#allocation15]  }
 0x14a   : > { %vm1074_vm2 = vcmp.eq.s32.totalorder %v3015_v51, 15  ;;  %v536_v4 = vmul.f32 %v534_v58, %v532_v5  ;;  %v1013_v0 = vsel %vm1007_vm5, %v1011_v7, %v979_v2  ;;  %v1046_v6 = vsel %vm1040_vm12, %v1045_v11, %v1012_v50  ;;  %p1957_p3 = scmp.ne.s32.totalorder %s3087_s11, %s1956_s24  ;;  %s1960_s27 = sshll.u32 %s2069_s1, 4  ;;  %s1961_s27 = int_to_ptr.vmem [resolvable:$false] %s1960_s27 }
 0x14b   : > { %v537_v62 = vmul.f32 %v535_v46, %v533_v17  ;;  %v1079_v20 = vstv %s2983_s29  ;;  %v1083_v59 = vmul.f32 0.6931472, %v1763_v31  ;;  %v1043_v22 = vsel %vm1041_vm7, %v2736_v39, %v1009_v30  ;;  %s3208_s29 = sld [smem:[#allocation31_spill]]  ;;  %s1962_s26 = scalar_lea.vmem %s1961_s27, 1024 }
 0x14c   : > { %v542_v9 = vadd.f32 %v540_v63, %v536_v4  ;;  %vm1075_vm8 = vcmp.eq.s32.totalorder %v2553_v1, 15  ;;  %v1076_v56 = vsel %vm1074_vm2, %v2563_v10, %v1042_v12  ;;  %v1047_v21 = vsel %vm1041_vm7, %v1045_v11, %v1013_v0  ;;  %p1958_p6 = pnand %p1957_p3, %p3201_p2  ;;  %p1963_p9 = scmp.lt.s32.totalorder %s3087_s11, %s1961_s27 }
 0x14d   : > { %v543_v48 = vadd.f32 %v541_v19, %v537_v62  ;;  %v1086_v23 = vadd.f32 %v1083_v59, %v2646_v34  ;;  %v1080_v39 = vsel %vm1074_vm2, %v1079_v20, %v1046_v6  ;;  %v1085_v42 = vmul.f32 0.6931472, %v1765_v61  ;;  %p1964_p4 = scmp.lt.s32.totalorder %s1962_s26, %s1956_s24 }
 0x14e   : > { %v558_v16 = vmul.f32 %v2859_v8, %v542_v9  ;;  %v1077_v10 = vsel %vm1075_vm8, %v2757_v53, %v1043_v22  ;;  %v1081_v28 = vsel %vm1075_vm8, %v1079_v20, %v1047_v21  ;;  %vm1088_vm15 = vcmp.eq.s32.totalorder %v3015_v51, 255  ;;  %p1959_p8 = pneg %p1958_p6 }
 0x14f   : > { %v559_v32 = vmul.f32 %v2861_v18, %v543_v48  ;;  %v1090_v26 = vsub.f32 %v1086_v23, %v1076_v56  ;;  %v1087_v27 = vadd.f32 %v1085_v42, %v2827_v24  ;;  %vm1089_vm9 = vcmp.eq.s32.totalorder %v2553_v1, 255  ;;  %p1965_p12 = por %p1964_p4, %p1963_p9 }
 0x151   : > { %v560_v34 = vadd.f32 %v559_v32, %v558_v16  ;;  %v1092_v8 = vmul.f32 %v1090_v26, %v1080_v39  ;;  %v1091_v25 = vsub.f32 %v1087_v27, %v1077_v10  ;;  %s3209_s21 = smov %s3208_s29  ;;  %s3092_s22 = scalar_lea.hbm %s3208_s29, %s1521_s8 }
 0x152   : > { %p1966_p7 = pnand %p1965_p12, %p1959_p8 }
 0x153   : > { %1100 = vst [vmem:[%s2843_s10] sm:$0xff] %v560_v34  ;;  %v1093_v33 = vmul.f32 %v1091_v25, %v1081_v28  ;;  %v1094_v47 = vsel %vm1088_vm15, 0.0, %v1092_v8 }
 0x155   : > { %v1095_v18 = vsel %vm1089_vm9, 0.0, %v1093_v33 }
 0x156   : > { %v1098_v53 = vadd.f32 %v1095_v18, %v1094_v47 }
 0x158   : > { %1502 = vst [vmem:[%s2843_s10 + $0x10] sm:$0xff] %v1098_v53 }
 0x159   : > { %1969 = shalt.err (!%p1966_p7)
}
 0x15a   : > { %s1970_s10 = scalar_lea.hbm %s3092_s22, 512  ;;  %s1974_s15 = scalar_lea.hbm %s3209_s21, 1024 }
 0x15b   : > { %p1971_p1 = scmp.ne.s32.totalorder %s3092_s22, %s1970_s10  ;;  %p1975_p5 = scmp.lt.u32.totalorder %s3092_s22, %s3209_s21 }
 0x15c   : > { %p1976_p10 = scmp.lt.u32.totalorder %s1974_s15, %s1970_s10  ;;  %p1978_p3 = scmp.lt.u32.totalorder %s1970_s10, %s3092_s22 }
 0x15d   : > { %p1972_p13 = pnand %p1971_p1, %p3201_p2 }
 0x15e   : > { %p1977_p0 = por %p1976_p10, %p1975_p5 }
 0x15f   : > { %p1973_p11 = pneg %p1972_p13 }
 0x160   : > { %p1979_p6 = por %p1978_p3, %p1977_p0 }
 0x162   : > { %p1980_p8 = pnand %p1979_p6, %p1973_p11 }
 0x164   : > { %1983 = shalt.err (!%p1980_p8)
}
 0x165   : > { %1536 = dma.vmem_to_hbm [thread:$0]  (%p3201_p2), %s3087_s11, 512, %s3092_s22, %s2796_s13, %s2065_s23, %s2065_s23, %s2066_s7  }
 0x166 PF: > { %s3210_s16 = sld [smem:[#allocation22_spill]]  ;;  %s3211_s14 = sld [smem:[#allocation28_spill]] }
 0x167   : > { %s3212_s28 = sld [smem:[#allocation25_spill]] }
 0x16c   : > { %s1184_s30 = sand.u32 1, %s3210_s16   ;;  %p3213_p9 = scmp.ne.s32.totalorder %s3211_s14, 0 }
 0x16d   : > { %p3214_p4 = scmp.ge.s32.totalorder %s3212_s28, 2  ;;  %s1185_s8 = scalar_lea.sflag [#allocation4], %s1184_s30 }
 0x16f   : > { %p1558_p12 = pnand %p3214_p4, %p3213_p9 }
 0x171   : > { %2025 = dma.done.wait (!%p1558_p12), %s1185_s8, 256  }
 0x172   : > { %2027 = vsyncadd (!%p1558_p12), %s1185_s8, 4294967040  ;;  %s3215_s18 = sadd.s32 4294967294, %s3212_s28  }
 0x173   : > { %s1193_s19 = sand.u32 1, %s3215_s18  }
 0x174   : > { %s1194_s9 = scalar_lea.sflag [#allocation14], %s1193_s19 }
 0x175   : > { %2029 = dma.done.wait (!%p1558_p12), %s1194_s9, 768  }
 0x176   : > { %2031 = vsyncadd (!%p1558_p12), %s1194_s9, 4294966528  ;;  %s34_s29 = sadd.s32 1, %s3212_s28   ;;  %s3216_s13 = sld [smem:[#allocation23_spill]] }
 0x177   : > { %p31_p2 = scmp.ge.s32.totalorder %s34_s29, 4   ;;  %s3217_s26 = sld [smem:[#allocation27_spill]] }
 0x178   : > { %s3218_s27 = sld [smem:[#allocation24_spill]]  ;;  %s3219_s28 = sld [smem:[#allocation26_spill]] }
 0x179   : > { %s3220_s24 = smov %s2038_s25  ;;  %33 = sbr.rel (!%p31_p2) target bundleno = 17 (0x11), region = 177 }
 0x17c   : > { %s3221_s25 = smov %s3216_s13 }
 0x180   :  { %1208 = vsyncpa [#allocation3], 1 }
 0x181   :  { %1210 = vsyncpa [#allocation3 + $0x1], 1 }
 0x182   :  { %1211 = vsyncpa [#allocation8], 1 }
 0x183   :  { %1213 = vsyncpa [#allocation8 + $0x1], 1 }
 0x184   :  { %1214 = vsyncpa [#allocation11], 1 }
 0x185   :  { %1216 = vsyncpa [#allocation11 + $0x1], 1 }
 0x186   :  { %1217 = vsyncpa [#allocation4], 1 }
 0x187   :  { %1219 = vsyncpa [#allocation4 + $0x1], 1 }
 0x188   :  { %1220 = vsyncpa [#allocation14], 1 }
 0x189   :  { %1222 = vsyncpa [#allocation14 + $0x1], 1 }
 0x18a   :  { %1223 = vsyncpa [#allocation5], 1 }
 0x18b   :  { %1225 = vsyncpa [#allocation5 + $0x1], 1 }

</bundles_post_ra>
